<compile_context>
chip_gen: v5e
topology: v5e:2x2
jax: 0.10.0
libtpu: 0.0.40
codegen_flags: <defaults>
</compile_context>

<pallas_src>
import functools

import jax
import jax.numpy as jnp
from jax.experimental import pallas as pl
from jax.experimental.pallas import tpu as pltpu

D_MODEL = 32
NHEAD = 8
HEAD_DIM = D_MODEL // NHEAD
DIM_FF = 64
EPS = 1e-5                      # torch.nn.LayerNorm default eps
_INV_SQRT2 = 0.7071067811865476


def _layer_norm(v, g, b):
    """torch.nn.LayerNorm over the last axis (biased variance)."""
    mu = jnp.mean(v, axis=-1, keepdims=True)
    vc = v - mu
    var = jnp.mean(vc * vc, axis=-1, keepdims=True)
    return vc * jax.lax.rsqrt(var + EPS) * g + b


def _cov(t):
    """covariance() from the reference: center over the last (feature) axis,
    unbiased 1/(D-1) scaling (D = HEAD_DIM > 1 here; torch uses 1/D iff D==1)."""
    tc = t - jnp.mean(t, axis=-1, keepdims=True)
    g = jax.lax.dot_general(tc, tc, (((1,), (1,)), ((), ())),
                            preferred_element_type=jnp.float32)
    return g * (1.0 / (HEAD_DIM - 1))


# ---------------------------------------------------------------------------
# Fused encoder-layer kernel: one grid step per batch element.
# ---------------------------------------------------------------------------
def _fused_encoder_kernel(
    x_ref,                          # (N, C)   one batch element of src
    pre_g_ref, pre_b_ref,           # (1, C)
    qkv_w_ref, qkv_b_ref,           # (C, 3C), (1, 3C)
    proj_w_ref, proj_b_ref,         # (H, hd, C), (1, C)
    n1_g_ref, n1_b_ref,             # (1, C)
    l1_w_ref, l1_b_ref,             # (C, FF), (1, FF)
    l2_w_ref, l2_b_ref,             # (FF, C), (1, C)
    out_ref,                        # (N, C)
    att_ref,                        # (H, N, N)
    qkv_scr,                        # VMEM scratch (N, 3C)
):
    x = x_ref[...]

    # x, w = self_attn(pre_norm(src))
    pre = _layer_norm(x, pre_g_ref[...], pre_b_ref[...])
    qkv_scr[...] = (
        jnp.dot(pre, qkv_w_ref[...], preferred_element_type=jnp.float32)
        + qkv_b_ref[...]
    )

    # Riemannian attention: per head, scores = |cov(q) - cov(k)|, softmax over
    # keys, out = att @ v.  The head loop is statically unrolled; everything
    # stays in VMEM / vregs.  The output projection is folded into the loop:
    #   acc += out_h @ proj_w[h*hd:(h+1)*hd, :]   (== concat_h(out_h) @ proj_w)
    # which removes the need for any in-kernel concatenate / transpose.
    # TODO(synk): for production-size N this keeps an O(N^2) attention block
    # resident per head; tile the key axis flash-style (running max/sum) and
    # consider bf16 att before scaling N (v7x VMEM is only 64 MiB).
    acc = jnp.zeros_like(x)
    for h in range(NHEAD):
        lo = h * HEAD_DIM
        hi = (h + 1) * HEAD_DIM
        qh = qkv_scr[:, lo:hi]                                     # (N, hd)
        kh = qkv_scr[:, D_MODEL + lo:D_MODEL + hi]                 # (N, hd)
        vh = qkv_scr[:, 2 * D_MODEL + lo:2 * D_MODEL + hi]         # (N, hd)

        # torch.norm over a size-1 trailing dim == abs
        dots = jnp.abs(_cov(qh) - _cov(kh))                        # (N, N)
        m = jnp.max(dots, axis=-1, keepdims=True)
        e = jnp.exp(dots - m)
        # NOTE: exact division kept here on purpose: pl.reciprocal(approx=True)
        # perturbs the *returned* attention rows by ~1e-4 while saving only a
        # few VALU ops at N=8 (noise-level perf delta).
        att_h = e / jnp.sum(e, axis=-1, keepdims=True)
        att_ref[h] = att_h.astype(att_ref.dtype)

        out_h = jnp.dot(att_h, vh, preferred_element_type=jnp.float32)   # (N, hd)
        acc = acc + jnp.dot(out_h, proj_w_ref[h],
                            preferred_element_type=jnp.float32)          # (N, C)

    attn_out = acc + proj_b_ref[...]

    # src = norm1(src + drop_path(x))   (dropout / drop_path = identity in eval)
    res = _layer_norm(x + attn_out, n1_g_ref[...], n1_b_ref[...])

    # src2 = linear2(gelu(linear1(src))); src = src + src2
    hid = jnp.dot(res, l1_w_ref[...], preferred_element_type=jnp.float32) + l1_b_ref[...]
    hid = 0.5 * hid * (1.0 + jax.lax.erf(hid * _INV_SQRT2))   # exact (erf) GELU
    src2 = jnp.dot(hid, l2_w_ref[...], preferred_element_type=jnp.float32) + l2_b_ref[...]

    out_ref[...] = (res + src2).astype(out_ref.dtype)


def _broadcast_spec(shape):
    # Same block index for every grid step -> DMA'd once, kept resident in VMEM.
    return pl.BlockSpec(shape, lambda *_: (0,) * len(shape))


# ---------------------------------------------------------------------------
# Full encoder layer forward (single pallas_call)
# ---------------------------------------------------------------------------
def riemmanian_encoder_layer(params, src):
    B, N, C = src.shape
    assert C == D_MODEL
    H, hd, FF = NHEAD, HEAD_DIM, DIM_FF

    # Wrapper-side layout plumbing (free): per-head view of the proj weight.
    proj_w3 = params["proj_w"].reshape(H, hd, C)

    out, att = pl.pallas_call(
        _fused_encoder_kernel,
        out_shape=(
            jax.ShapeDtypeStruct((B, N, C), jnp.float32),
            jax.ShapeDtypeStruct((B, H, N, N), jnp.float32),
        ),
        grid=(B,),
        in_specs=[
            pl.BlockSpec((None, N, C), lambda b: (b, 0, 0)),            # src
            _broadcast_spec((1, C)), _broadcast_spec((1, C)),           # pre_norm g, b
            _broadcast_spec((C, 3 * C)), _broadcast_spec((1, 3 * C)),   # qkv w, b
            _broadcast_spec((H, hd, C)), _broadcast_spec((1, C)),       # proj w, b
            _broadcast_spec((1, C)), _broadcast_spec((1, C)),           # norm1 g, b
            _broadcast_spec((C, FF)), _broadcast_spec((1, FF)),         # linear1 w, b
            _broadcast_spec((FF, C)), _broadcast_spec((1, C)),          # linear2 w, b
        ],
        out_specs=(
            pl.BlockSpec((None, N, C), lambda b: (b, 0, 0)),
            pl.BlockSpec((None, H, N, N), lambda b: (b, 0, 0, 0)),
        ),
        scratch_shapes=[pltpu.VMEM((N, 3 * C), jnp.float32)],
        compiler_params=pltpu.CompilerParams(
            dimension_semantics=("parallel",),   # v7x: one batch per TensorCore
        ),
    )(
        src,
        params["pre_norm_g"].reshape(1, C), params["pre_norm_b"].reshape(1, C),
        params["qkv_w"], params["qkv_b"].reshape(1, 3 * C),
        proj_w3, params["proj_b"].reshape(1, C),
        params["norm1_g"].reshape(1, C), params["norm1_b"].reshape(1, C),
        params["lin1_w"], params["lin1_b"].reshape(1, FF),
        params["lin2_w"], params["lin2_b"].reshape(1, C),
    )
    return out, att


# ---------------------------------------------------------------------------
# Parameters (deterministic synthetic init; Linear weights stored as (in, out))
# ---------------------------------------------------------------------------
def init_params(key):
    ks = jax.random.split(key, 10)

    def w(k, shape, scale=0.05):
        return (scale * jax.random.normal(k, shape)).astype(jnp.float32)

    # NOTE: the reference module also defines `self.scale`, which is never used
    # in its forward(), so it is intentionally not part of the computation.
    return dict(
        pre_norm_g=jnp.ones((D_MODEL,), jnp.float32),
        pre_norm_b=jnp.zeros((D_MODEL,), jnp.float32),
        qkv_w=w(ks[0], (D_MODEL, 3 * D_MODEL)),
        qkv_b=w(ks[1], (3 * D_MODEL,)),
        proj_w=w(ks[2], (D_MODEL, D_MODEL)),
        proj_b=w(ks[3], (D_MODEL,)),
        norm1_g=jnp.ones((D_MODEL,), jnp.float32),
        norm1_b=jnp.zeros((D_MODEL,), jnp.float32),
        lin1_w=w(ks[4], (D_MODEL, DIM_FF)),
        lin1_b=w(ks[5], (DIM_FF,)),
        lin2_w=w(ks[6], (DIM_FF, D_MODEL)),
        lin2_b=w(ks[7], (D_MODEL,)),
    )


# ---------------------------------------------------------------------------
# Pure-JAX reference (HIGHEST matmul precision) for correctness checking
# ---------------------------------------------------------------------------
def _reference_forward(params, src):
    B, N, C = src.shape
    H, hd = NHEAD, HEAD_DIM
    prec = jax.lax.Precision.HIGHEST

    def ln(v, g, b):
        mu = jnp.mean(v, axis=-1, keepdims=True)
        var = jnp.mean((v - mu) ** 2, axis=-1, keepdims=True)
        return (v - mu) * jax.lax.rsqrt(var + EPS) * g + b

    pre = ln(src, params["pre_norm_g"], params["pre_norm_b"])
    qkv = jnp.einsum("bnc,cd->bnd", pre, params["qkv_w"], precision=prec) + params["qkv_b"]
    qkv = qkv.reshape(B, N, 3, H, hd).transpose(2, 0, 3, 1, 4)
    q, k, v = qkv[0], qkv[1], qkv[2]

    def cov(t):
        tc = t - jnp.mean(t, axis=-1, keepdims=True)
        return jnp.einsum("bhnd,bhmd->bhnm", tc, tc, precision=prec) / (hd - 1)

    dots = jnp.abs(cov(q) - cov(k))
    att = jax.nn.softmax(dots, axis=-1)
    out = jnp.einsum("bhnm,bhmd->bhnd", att, v, precision=prec)
    out = out.transpose(0, 2, 1, 3).reshape(B, N, C)
    x_attn = jnp.einsum("bnc,cd->bnd", out, params["proj_w"], precision=prec) + params["proj_b"]
    res = ln(src + x_attn, params["norm1_g"], params["norm1_b"])
    hid = jnp.einsum("bnc,cf->bnf", res, params["lin1_w"], precision=prec) + params["lin1_b"]
    hid = 0.5 * hid * (1.0 + jax.lax.erf(hid * _INV_SQRT2))
    src2 = jnp.einsum("bnf,fc->bnc", hid, params["lin2_w"], precision=prec) + params["lin2_b"]
    return res + src2, att


if __name__ == "__main__":
    key = jax.random.PRNGKey(0)
    kp, kx = jax.random.split(key)
    params = init_params(kp)
    src = jax.random.normal(kx, (2, 8, D_MODEL), dtype=jnp.float32)

    fwd = jax.jit(functools.partial(riemmanian_encoder_layer, params))
    out, att = fwd(src)
    jax.block_until_ready((out, att))

    assert out.shape == (2, 8, D_MODEL) and out.dtype == jnp.float32
    assert att.shape == (2, NHEAD, 8, 8) and att.dtype == jnp.float32
    assert bool(jnp.all(jnp.isfinite(out))) and bool(jnp.all(jnp.isfinite(att)))
    # attention rows must sum to 1
    assert bool(jnp.allclose(jnp.sum(att, axis=-1), 1.0, atol=1e-5))

    # check against a pure-JAX reference of the same forward pass
    ref_out, ref_att = _reference_forward(params, src)
    assert bool(jnp.allclose(out, ref_out, atol=5e-3, rtol=5e-3)), \
        float(jnp.max(jnp.abs(out - ref_out)))
    assert bool(jnp.allclose(att, ref_att, atol=5e-3, rtol=5e-3)), \
        float(jnp.max(jnp.abs(att - ref_att)))

    print("KERNEL_OK")
</pallas_src>

<mosaic_0001>
module attributes {stable_mosaic.version = 11 : i64} {
  func.func @_fused_encoder_kernel(%arg0: i32, %arg1: memref<1x8x32xf32, #tpu.memory_space<vmem>>, %arg2: memref<1x32xf32, #tpu.memory_space<vmem>>, %arg3: memref<1x32xf32, #tpu.memory_space<vmem>>, %arg4: memref<32x96xf32, #tpu.memory_space<vmem>>, %arg5: memref<1x96xf32, #tpu.memory_space<vmem>>, %arg6: memref<8x4x32xf32, #tpu.memory_space<vmem>>, %arg7: memref<1x32xf32, #tpu.memory_space<vmem>>, %arg8: memref<1x32xf32, #tpu.memory_space<vmem>>, %arg9: memref<1x32xf32, #tpu.memory_space<vmem>>, %arg10: memref<32x64xf32, #tpu.memory_space<vmem>>, %arg11: memref<1x64xf32, #tpu.memory_space<vmem>>, %arg12: memref<64x32xf32, #tpu.memory_space<vmem>>, %arg13: memref<1x32xf32, #tpu.memory_space<vmem>>, %arg14: memref<1x8x32xf32, #tpu.memory_space<vmem>>, %arg15: memref<1x8x8x8xf32, #tpu.memory_space<vmem>>, %arg16: memref<8x96xf32, #tpu.memory_space<vmem>>) attributes {dimension_semantics = [#tpu.dimension_semantics<parallel>], iteration_bounds = array<i64: 2>, scalar_prefetch = 0 : i64, scratch_operands = 1 : i64, tpu.core_type = #tpu.core_type<tc>, window_params = [{transform_indices = @transform_0, window_bounds = array<i64: 1, 8, 32>}, {pipeline_mode = #tpu.pipeline_mode<synchronous>, transform_indices = @transform_1, window_bounds = array<i64: 1, 32>}, {pipeline_mode = #tpu.pipeline_mode<synchronous>, transform_indices = @transform_2, window_bounds = array<i64: 1, 32>}, {pipeline_mode = #tpu.pipeline_mode<synchronous>, transform_indices = @transform_3, window_bounds = array<i64: 32, 96>}, {pipeline_mode = #tpu.pipeline_mode<synchronous>, transform_indices = @transform_4, window_bounds = array<i64: 1, 96>}, {pipeline_mode = #tpu.pipeline_mode<synchronous>, transform_indices = @transform_5, window_bounds = array<i64: 8, 4, 32>}, {pipeline_mode = #tpu.pipeline_mode<synchronous>, transform_indices = @transform_6, window_bounds = array<i64: 1, 32>}, {pipeline_mode = #tpu.pipeline_mode<synchronous>, transform_indices = @transform_7, window_bounds = array<i64: 1, 32>}, {pipeline_mode = #tpu.pipeline_mode<synchronous>, transform_indices = @transform_8, window_bounds = array<i64: 1, 32>}, {pipeline_mode = #tpu.pipeline_mode<synchronous>, transform_indices = @transform_9, window_bounds = array<i64: 32, 64>}, {pipeline_mode = #tpu.pipeline_mode<synchronous>, transform_indices = @transform_10, window_bounds = array<i64: 1, 64>}, {pipeline_mode = #tpu.pipeline_mode<synchronous>, transform_indices = @transform_11, window_bounds = array<i64: 64, 32>}, {pipeline_mode = #tpu.pipeline_mode<synchronous>, transform_indices = @transform_12, window_bounds = array<i64: 1, 32>}, {transform_indices = @transform_13, window_bounds = array<i64: 1, 8, 32>}, {transform_indices = @transform_14, window_bounds = array<i64: 1, 8, 8, 8>}]} {
    %c0 = arith.constant 0 : index
    %c0_0 = arith.constant 0 : index
    %c0_1 = arith.constant 0 : index
    %0 = vector.load %arg1[%c0, %c0_0, %c0_1] : memref<1x8x32xf32, #tpu.memory_space<vmem>>, vector<1x8x32xf32>
    %1 = vector.shape_cast %0 : vector<1x8x32xf32> to vector<8x32xf32>
    %c0_2 = arith.constant 0 : index
    %c0_3 = arith.constant 0 : index
    %2 = vector.load %arg2[%c0_2, %c0_3] : memref<1x32xf32, #tpu.memory_space<vmem>>, vector<1x32xf32>
    %c0_4 = arith.constant 0 : index
    %c0_5 = arith.constant 0 : index
    %3 = vector.load %arg3[%c0_4, %c0_5] : memref<1x32xf32, #tpu.memory_space<vmem>>, vector<1x32xf32>
    %cst = arith.constant dense<0.000000e+00> : vector<8xf32>
    %4 = vector.multi_reduction <add>, %1, %cst [1] : vector<8x32xf32> to vector<8xf32>
    %5 = vector.shape_cast %4 : vector<8xf32> to vector<8x1xf32>
    %cst_6 = arith.constant 3.200000e+01 : f32
    %6 = vector.broadcast %cst_6 : f32 to vector<8x1xf32>
    %7 = arith.divf %5, %6 : vector<8x1xf32>
    %8 = vector.broadcast %7 : vector<8x1xf32> to vector<8x32xf32>
    %9 = arith.subf %1, %8 : vector<8x32xf32>
    %10 = arith.mulf %9, %9 : vector<8x32xf32>
    %cst_7 = arith.constant dense<0.000000e+00> : vector<8xf32>
    %11 = vector.multi_reduction <add>, %10, %cst_7 [1] : vector<8x32xf32> to vector<8xf32>
    %12 = vector.shape_cast %11 : vector<8xf32> to vector<8x1xf32>
    %cst_8 = arith.constant 3.200000e+01 : f32
    %13 = vector.broadcast %cst_8 : f32 to vector<8x1xf32>
    %14 = arith.divf %12, %13 : vector<8x1xf32>
    %cst_9 = arith.constant 9.99999974E-6 : f32
    %15 = vector.broadcast %cst_9 : f32 to vector<8x1xf32>
    %16 = arith.addf %14, %15 : vector<8x1xf32>
    %17 = math.rsqrt %16 : vector<8x1xf32>
    %18 = vector.broadcast %17 : vector<8x1xf32> to vector<8x32xf32>
    %19 = arith.mulf %9, %18 : vector<8x32xf32>
    %20 = vector.broadcast %2 : vector<1x32xf32> to vector<8x32xf32>
    %21 = arith.mulf %19, %20 : vector<8x32xf32>
    %22 = vector.broadcast %3 : vector<1x32xf32> to vector<8x32xf32>
    %23 = arith.addf %21, %22 : vector<8x32xf32>
    %c0_10 = arith.constant 0 : index
    %c0_11 = arith.constant 0 : index
    %24 = vector.load %arg4[%c0_10, %c0_11] : memref<32x96xf32, #tpu.memory_space<vmem>>, vector<32x96xf32>
    %cst_12 = arith.constant dense<0.000000e+00> : vector<8x96xf32>
    %25 = tpu.matmul %23, %24, %cst_12 {dimension_numbers = #tpu.dot_dimension_numbers<[1], [0], [0], [1], [0, 0, 1, 1], [], []>} : vector<8x32xf32>, vector<32x96xf32>, vector<8x96xf32> -> vector<8x96xf32>
    %c0_13 = arith.constant 0 : index
    %c0_14 = arith.constant 0 : index
    %26 = vector.load %arg5[%c0_13, %c0_14] : memref<1x96xf32, #tpu.memory_space<vmem>>, vector<1x96xf32>
    %27 = vector.broadcast %26 : vector<1x96xf32> to vector<8x96xf32>
    %28 = arith.addf %25, %27 : vector<8x96xf32>
    %c0_15 = arith.constant 0 : index
    %c0_16 = arith.constant 0 : index
    %29 = vector.load %arg16[%c0_15, %c0_16] : memref<8x96xf32, #tpu.memory_space<vmem>>, vector<8x96xf32>
    tpu.vector_store %arg16[%c0_15, %c0_16], %28 {strides = array<i32>} : memref<8x96xf32, #tpu.memory_space<vmem>>, vector<8x96xf32>,
    %cst_17 = arith.constant 0.000000e+00 : f32
    %30 = vector.broadcast %cst_17 : f32 to vector<8x32xf32>
    %c0_18 = arith.constant 0 : index
    %c0_19 = arith.constant 0 : index
    %31 = vector.load %arg16[%c0_18, %c0_19] : memref<8x96xf32, #tpu.memory_space<vmem>>, vector<8x4xf32>
    %c0_20 = arith.constant 0 : index
    %c32 = arith.constant 32 : index
    %32 = vector.load %arg16[%c0_20, %c32] : memref<8x96xf32, #tpu.memory_space<vmem>>, vector<8x4xf32>
    %c0_21 = arith.constant 0 : index
    %c64 = arith.constant 64 : index
    %33 = vector.load %arg16[%c0_21, %c64] : memref<8x96xf32, #tpu.memory_space<vmem>>, vector<8x4xf32>
    %cst_22 = arith.constant dense<0.000000e+00> : vector<8xf32>
    %34 = vector.multi_reduction <add>, %31, %cst_22 [1] : vector<8x4xf32> to vector<8xf32>
    %35 = vector.shape_cast %34 : vector<8xf32> to vector<8x1xf32>
    %cst_23 = arith.constant 4.000000e+00 : f32
    %36 = vector.broadcast %cst_23 : f32 to vector<8x1xf32>
    %37 = arith.divf %35, %36 : vector<8x1xf32>
    %38 = vector.broadcast %37 : vector<8x1xf32> to vector<8x4xf32>
    %39 = arith.subf %31, %38 : vector<8x4xf32>
    %cst_24 = arith.constant dense<0.000000e+00> : vector<8x8xf32>
    %40 = tpu.matmul %39, %39, %cst_24 {dimension_numbers = #tpu.dot_dimension_numbers<[1], [1], [0], [0], [0, 0, 1, 0], [], []>} : vector<8x4xf32>, vector<8x4xf32>, vector<8x8xf32> -> vector<8x8xf32>
    %cst_25 = arith.constant 0.333333343 : f32
    %41 = vector.broadcast %cst_25 : f32 to vector<8x8xf32>
    %42 = arith.mulf %40, %41 : vector<8x8xf32>
    %cst_26 = arith.constant dense<0.000000e+00> : vector<8xf32>
    %43 = vector.multi_reduction <add>, %32, %cst_26 [1] : vector<8x4xf32> to vector<8xf32>
    %44 = vector.shape_cast %43 : vector<8xf32> to vector<8x1xf32>
    %cst_27 = arith.constant 4.000000e+00 : f32
    %45 = vector.broadcast %cst_27 : f32 to vector<8x1xf32>
    %46 = arith.divf %44, %45 : vector<8x1xf32>
    %47 = vector.broadcast %46 : vector<8x1xf32> to vector<8x4xf32>
    %48 = arith.subf %32, %47 : vector<8x4xf32>
    %cst_28 = arith.constant dense<0.000000e+00> : vector<8x8xf32>
    %49 = tpu.matmul %48, %48, %cst_28 {dimension_numbers = #tpu.dot_dimension_numbers<[1], [1], [0], [0], [0, 0, 1, 0], [], []>} : vector<8x4xf32>, vector<8x4xf32>, vector<8x8xf32> -> vector<8x8xf32>
    %cst_29 = arith.constant 0.333333343 : f32
    %50 = vector.broadcast %cst_29 : f32 to vector<8x8xf32>
    %51 = arith.mulf %49, %50 : vector<8x8xf32>
    %52 = arith.subf %42, %51 : vector<8x8xf32>
    %53 = math.absf %52 : vector<8x8xf32>
    %cst_30 = arith.constant dense<0xFF800000> : vector<8xf32>
    %54 = vector.multi_reduction <maximumf>, %53, %cst_30 [1] : vector<8x8xf32> to vector<8xf32>
    %55 = vector.shape_cast %54 : vector<8xf32> to vector<8x1xf32>
    %56 = vector.broadcast %55 : vector<8x1xf32> to vector<8x8xf32>
    %57 = arith.subf %53, %56 : vector<8x8xf32>
    %58 = math.exp %57 : vector<8x8xf32>
    %cst_31 = arith.constant dense<0.000000e+00> : vector<8xf32>
    %59 = vector.multi_reduction <add>, %58, %cst_31 [1] : vector<8x8xf32> to vector<8xf32>
    %60 = vector.shape_cast %59 : vector<8xf32> to vector<8x1xf32>
    %61 = vector.broadcast %60 : vector<8x1xf32> to vector<8x8xf32>
    %62 = arith.divf %58, %61 : vector<8x8xf32>
    %c0_32 = arith.constant 0 : index
    %c0_33 = arith.constant 0 : index
    %c0_34 = arith.constant 0 : index
    %c0_35 = arith.constant 0 : index
    %63 = vector.load %arg15[%c0_32, %c0_33, %c0_34, %c0_35] : memref<1x8x8x8xf32, #tpu.memory_space<vmem>>, vector<1x1x8x8xf32>
    %64 = vector.shape_cast %63 : vector<1x1x8x8xf32> to vector<8x8xf32>
    %65 = vector.shape_cast %62 : vector<8x8xf32> to vector<1x1x8x8xf32>
    tpu.vector_store %arg15[%c0_32, %c0_33, %c0_34, %c0_35], %65 {strides = array<i32>} : memref<1x8x8x8xf32, #tpu.memory_space<vmem>>, vector<1x1x8x8xf32>,
    %cst_36 = arith.constant dense<0.000000e+00> : vector<8x4xf32>
    %66 = tpu.matmul %62, %33, %cst_36 {dimension_numbers = #tpu.dot_dimension_numbers<[1], [0], [0], [1], [0, 0, 1, 1], [], []>} : vector<8x8xf32>, vector<8x4xf32>, vector<8x4xf32> -> vector<8x4xf32>
    %c0_37 = arith.constant 0 : index
    %c0_38 = arith.constant 0 : index
    %c0_39 = arith.constant 0 : index
    %67 = vector.load %arg6[%c0_37, %c0_38, %c0_39] : memref<8x4x32xf32, #tpu.memory_space<vmem>>, vector<1x4x32xf32>
    %68 = vector.shape_cast %67 : vector<1x4x32xf32> to vector<4x32xf32>
    %cst_40 = arith.constant dense<0.000000e+00> : vector<8x32xf32>
    %69 = tpu.matmul %66, %68, %cst_40 {dimension_numbers = #tpu.dot_dimension_numbers<[1], [0], [0], [1], [0, 0, 1, 1], [], []>} : vector<8x4xf32>, vector<4x32xf32>, vector<8x32xf32> -> vector<8x32xf32>
    %70 = arith.addf %30, %69 : vector<8x32xf32>
    %c0_41 = arith.constant 0 : index
    %c4 = arith.constant 4 : index
    %71 = vector.load %arg16[%c0_41, %c4] : memref<8x96xf32, #tpu.memory_space<vmem>>, vector<8x4xf32>
    %c0_42 = arith.constant 0 : index
    %c36 = arith.constant 36 : index
    %72 = vector.load %arg16[%c0_42, %c36] : memref<8x96xf32, #tpu.memory_space<vmem>>, vector<8x4xf32>
    %c0_43 = arith.constant 0 : index
    %c68 = arith.constant 68 : index
    %73 = vector.load %arg16[%c0_43, %c68] : memref<8x96xf32, #tpu.memory_space<vmem>>, vector<8x4xf32>
    %cst_44 = arith.constant dense<0.000000e+00> : vector<8xf32>
    %74 = vector.multi_reduction <add>, %71, %cst_44 [1] : vector<8x4xf32> to vector<8xf32>
    %75 = vector.shape_cast %74 : vector<8xf32> to vector<8x1xf32>
    %cst_45 = arith.constant 4.000000e+00 : f32
    %76 = vector.broadcast %cst_45 : f32 to vector<8x1xf32>
    %77 = arith.divf %75, %76 : vector<8x1xf32>
    %78 = vector.broadcast %77 : vector<8x1xf32> to vector<8x4xf32>
    %79 = arith.subf %71, %78 : vector<8x4xf32>
    %cst_46 = arith.constant dense<0.000000e+00> : vector<8x8xf32>
    %80 = tpu.matmul %79, %79, %cst_46 {dimension_numbers = #tpu.dot_dimension_numbers<[1], [1], [0], [0], [0, 0, 1, 0], [], []>} : vector<8x4xf32>, vector<8x4xf32>, vector<8x8xf32> -> vector<8x8xf32>
    %cst_47 = arith.constant 0.333333343 : f32
    %81 = vector.broadcast %cst_47 : f32 to vector<8x8xf32>
    %82 = arith.mulf %80, %81 : vector<8x8xf32>
    %cst_48 = arith.constant dense<0.000000e+00> : vector<8xf32>
    %83 = vector.multi_reduction <add>, %72, %cst_48 [1] : vector<8x4xf32> to vector<8xf32>
    %84 = vector.shape_cast %83 : vector<8xf32> to vector<8x1xf32>
    %cst_49 = arith.constant 4.000000e+00 : f32
    %85 = vector.broadcast %cst_49 : f32 to vector<8x1xf32>
    %86 = arith.divf %84, %85 : vector<8x1xf32>
    %87 = vector.broadcast %86 : vector<8x1xf32> to vector<8x4xf32>
    %88 = arith.subf %72, %87 : vector<8x4xf32>
    %cst_50 = arith.constant dense<0.000000e+00> : vector<8x8xf32>
    %89 = tpu.matmul %88, %88, %cst_50 {dimension_numbers = #tpu.dot_dimension_numbers<[1], [1], [0], [0], [0, 0, 1, 0], [], []>} : vector<8x4xf32>, vector<8x4xf32>, vector<8x8xf32> -> vector<8x8xf32>
    %cst_51 = arith.constant 0.333333343 : f32
    %90 = vector.broadcast %cst_51 : f32 to vector<8x8xf32>
    %91 = arith.mulf %89, %90 : vector<8x8xf32>
    %92 = arith.subf %82, %91 : vector<8x8xf32>
    %93 = math.absf %92 : vector<8x8xf32>
    %cst_52 = arith.constant dense<0xFF800000> : vector<8xf32>
    %94 = vector.multi_reduction <maximumf>, %93, %cst_52 [1] : vector<8x8xf32> to vector<8xf32>
    %95 = vector.shape_cast %94 : vector<8xf32> to vector<8x1xf32>
    %96 = vector.broadcast %95 : vector<8x1xf32> to vector<8x8xf32>
    %97 = arith.subf %93, %96 : vector<8x8xf32>
    %98 = math.exp %97 : vector<8x8xf32>
    %cst_53 = arith.constant dense<0.000000e+00> : vector<8xf32>
    %99 = vector.multi_reduction <add>, %98, %cst_53 [1] : vector<8x8xf32> to vector<8xf32>
    %100 = vector.shape_cast %99 : vector<8xf32> to vector<8x1xf32>
    %101 = vector.broadcast %100 : vector<8x1xf32> to vector<8x8xf32>
    %102 = arith.divf %98, %101 : vector<8x8xf32>
    %c0_54 = arith.constant 0 : index
    %c1 = arith.constant 1 : index
    %c0_55 = arith.constant 0 : index
    %c0_56 = arith.constant 0 : index
    %103 = vector.load %arg15[%c0_54, %c1, %c0_55, %c0_56] : memref<1x8x8x8xf32, #tpu.memory_space<vmem>>, vector<1x1x8x8xf32>
    %104 = vector.shape_cast %103 : vector<1x1x8x8xf32> to vector<8x8xf32>
    %105 = vector.shape_cast %102 : vector<8x8xf32> to vector<1x1x8x8xf32>
    tpu.vector_store %arg15[%c0_54, %c1, %c0_55, %c0_56], %105 {strides = array<i32>} : memref<1x8x8x8xf32, #tpu.memory_space<vmem>>, vector<1x1x8x8xf32>,
    %cst_57 = arith.constant dense<0.000000e+00> : vector<8x4xf32>
    %106 = tpu.matmul %102, %73, %cst_57 {dimension_numbers = #tpu.dot_dimension_numbers<[1], [0], [0], [1], [0, 0, 1, 1], [], []>} : vector<8x8xf32>, vector<8x4xf32>, vector<8x4xf32> -> vector<8x4xf32>
    %c1_58 = arith.constant 1 : index
    %c0_59 = arith.constant 0 : index
    %c0_60 = arith.constant 0 : index
    %107 = vector.load %arg6[%c1_58, %c0_59, %c0_60] : memref<8x4x32xf32, #tpu.memory_space<vmem>>, vector<1x4x32xf32>
    %108 = vector.shape_cast %107 : vector<1x4x32xf32> to vector<4x32xf32>
    %cst_61 = arith.constant dense<0.000000e+00> : vector<8x32xf32>
    %109 = tpu.matmul %106, %108, %cst_61 {dimension_numbers = #tpu.dot_dimension_numbers<[1], [0], [0], [1], [0, 0, 1, 1], [], []>} : vector<8x4xf32>, vector<4x32xf32>, vector<8x32xf32> -> vector<8x32xf32>
    %110 = arith.addf %70, %109 : vector<8x32xf32>
    %c0_62 = arith.constant 0 : index
    %c8 = arith.constant 8 : index
    %111 = vector.load %arg16[%c0_62, %c8] : memref<8x96xf32, #tpu.memory_space<vmem>>, vector<8x4xf32>
    %c0_63 = arith.constant 0 : index
    %c40 = arith.constant 40 : index
    %112 = vector.load %arg16[%c0_63, %c40] : memref<8x96xf32, #tpu.memory_space<vmem>>, vector<8x4xf32>
    %c0_64 = arith.constant 0 : index
    %c72 = arith.constant 72 : index
    %113 = vector.load %arg16[%c0_64, %c72] : memref<8x96xf32, #tpu.memory_space<vmem>>, vector<8x4xf32>
    %cst_65 = arith.constant dense<0.000000e+00> : vector<8xf32>
    %114 = vector.multi_reduction <add>, %111, %cst_65 [1] : vector<8x4xf32> to vector<8xf32>
    %115 = vector.shape_cast %114 : vector<8xf32> to vector<8x1xf32>
    %cst_66 = arith.constant 4.000000e+00 : f32
    %116 = vector.broadcast %cst_66 : f32 to vector<8x1xf32>
    %117 = arith.divf %115, %116 : vector<8x1xf32>
    %118 = vector.broadcast %117 : vector<8x1xf32> to vector<8x4xf32>
    %119 = arith.subf %111, %118 : vector<8x4xf32>
    %cst_67 = arith.constant dense<0.000000e+00> : vector<8x8xf32>
    %120 = tpu.matmul %119, %119, %cst_67 {dimension_numbers = #tpu.dot_dimension_numbers<[1], [1], [0], [0], [0, 0, 1, 0], [], []>} : vector<8x4xf32>, vector<8x4xf32>, vector<8x8xf32> -> vector<8x8xf32>
    %cst_68 = arith.constant 0.333333343 : f32
    %121 = vector.broadcast %cst_68 : f32 to vector<8x8xf32>
    %122 = arith.mulf %120, %121 : vector<8x8xf32>
    %cst_69 = arith.constant dense<0.000000e+00> : vector<8xf32>
    %123 = vector.multi_reduction <add>, %112, %cst_69 [1] : vector<8x4xf32> to vector<8xf32>
    %124 = vector.shape_cast %123 : vector<8xf32> to vector<8x1xf32>
    %cst_70 = arith.constant 4.000000e+00 : f32
    %125 = vector.broadcast %cst_70 : f32 to vector<8x1xf32>
    %126 = arith.divf %124, %125 : vector<8x1xf32>
    %127 = vector.broadcast %126 : vector<8x1xf32> to vector<8x4xf32>
    %128 = arith.subf %112, %127 : vector<8x4xf32>
    %cst_71 = arith.constant dense<0.000000e+00> : vector<8x8xf32>
    %129 = tpu.matmul %128, %128, %cst_71 {dimension_numbers = #tpu.dot_dimension_numbers<[1], [1], [0], [0], [0, 0, 1, 0], [], []>} : vector<8x4xf32>, vector<8x4xf32>, vector<8x8xf32> -> vector<8x8xf32>
    %cst_72 = arith.constant 0.333333343 : f32
    %130 = vector.broadcast %cst_72 : f32 to vector<8x8xf32>
    %131 = arith.mulf %129, %130 : vector<8x8xf32>
    %132 = arith.subf %122, %131 : vector<8x8xf32>
    %133 = math.absf %132 : vector<8x8xf32>
    %cst_73 = arith.constant dense<0xFF800000> : vector<8xf32>
    %134 = vector.multi_reduction <maximumf>, %133, %cst_73 [1] : vector<8x8xf32> to vector<8xf32>
    %135 = vector.shape_cast %134 : vector<8xf32> to vector<8x1xf32>
    %136 = vector.broadcast %135 : vector<8x1xf32> to vector<8x8xf32>
    %137 = arith.subf %133, %136 : vector<8x8xf32>
    %138 = math.exp %137 : vector<8x8xf32>
    %cst_74 = arith.constant dense<0.000000e+00> : vector<8xf32>
    %139 = vector.multi_reduction <add>, %138, %cst_74 [1] : vector<8x8xf32> to vector<8xf32>
    %140 = vector.shape_cast %139 : vector<8xf32> to vector<8x1xf32>
    %141 = vector.broadcast %140 : vector<8x1xf32> to vector<8x8xf32>
    %142 = arith.divf %138, %141 : vector<8x8xf32>
    %c0_75 = arith.constant 0 : index
    %c2 = arith.constant 2 : index
    %c0_76 = arith.constant 0 : index
    %c0_77 = arith.constant 0 : index
    %143 = vector.load %arg15[%c0_75, %c2, %c0_76, %c0_77] : memref<1x8x8x8xf32, #tpu.memory_space<vmem>>, vector<1x1x8x8xf32>
    %144 = vector.shape_cast %143 : vector<1x1x8x8xf32> to vector<8x8xf32>
    %145 = vector.shape_cast %142 : vector<8x8xf32> to vector<1x1x8x8xf32>
    tpu.vector_store %arg15[%c0_75, %c2, %c0_76, %c0_77], %145 {strides = array<i32>} : memref<1x8x8x8xf32, #tpu.memory_space<vmem>>, vector<1x1x8x8xf32>,
    %cst_78 = arith.constant dense<0.000000e+00> : vector<8x4xf32>
    %146 = tpu.matmul %142, %113, %cst_78 {dimension_numbers = #tpu.dot_dimension_numbers<[1], [0], [0], [1], [0, 0, 1, 1], [], []>} : vector<8x8xf32>, vector<8x4xf32>, vector<8x4xf32> -> vector<8x4xf32>
    %c2_79 = arith.constant 2 : index
    %c0_80 = arith.constant 0 : index
    %c0_81 = arith.constant 0 : index
    %147 = vector.load %arg6[%c2_79, %c0_80, %c0_81] : memref<8x4x32xf32, #tpu.memory_space<vmem>>, vector<1x4x32xf32>
    %148 = vector.shape_cast %147 : vector<1x4x32xf32> to vector<4x32xf32>
    %cst_82 = arith.constant dense<0.000000e+00> : vector<8x32xf32>
    %149 = tpu.matmul %146, %148, %cst_82 {dimension_numbers = #tpu.dot_dimension_numbers<[1], [0], [0], [1], [0, 0, 1, 1], [], []>} : vector<8x4xf32>, vector<4x32xf32>, vector<8x32xf32> -> vector<8x32xf32>
    %150 = arith.addf %110, %149 : vector<8x32xf32>
    %c0_83 = arith.constant 0 : index
    %c12 = arith.constant 12 : index
    %151 = vector.load %arg16[%c0_83, %c12] : memref<8x96xf32, #tpu.memory_space<vmem>>, vector<8x4xf32>
    %c0_84 = arith.constant 0 : index
    %c44 = arith.constant 44 : index
    %152 = vector.load %arg16[%c0_84, %c44] : memref<8x96xf32, #tpu.memory_space<vmem>>, vector<8x4xf32>
    %c0_85 = arith.constant 0 : index
    %c76 = arith.constant 76 : index
    %153 = vector.load %arg16[%c0_85, %c76] : memref<8x96xf32, #tpu.memory_space<vmem>>, vector<8x4xf32>
    %cst_86 = arith.constant dense<0.000000e+00> : vector<8xf32>
    %154 = vector.multi_reduction <add>, %151, %cst_86 [1] : vector<8x4xf32> to vector<8xf32>
    %155 = vector.shape_cast %154 : vector<8xf32> to vector<8x1xf32>
    %cst_87 = arith.constant 4.000000e+00 : f32
    %156 = vector.broadcast %cst_87 : f32 to vector<8x1xf32>
    %157 = arith.divf %155, %156 : vector<8x1xf32>
    %158 = vector.broadcast %157 : vector<8x1xf32> to vector<8x4xf32>
    %159 = arith.subf %151, %158 : vector<8x4xf32>
    %cst_88 = arith.constant dense<0.000000e+00> : vector<8x8xf32>
    %160 = tpu.matmul %159, %159, %cst_88 {dimension_numbers = #tpu.dot_dimension_numbers<[1], [1], [0], [0], [0, 0, 1, 0], [], []>} : vector<8x4xf32>, vector<8x4xf32>, vector<8x8xf32> -> vector<8x8xf32>
    %cst_89 = arith.constant 0.333333343 : f32
    %161 = vector.broadcast %cst_89 : f32 to vector<8x8xf32>
    %162 = arith.mulf %160, %161 : vector<8x8xf32>
    %cst_90 = arith.constant dense<0.000000e+00> : vector<8xf32>
    %163 = vector.multi_reduction <add>, %152, %cst_90 [1] : vector<8x4xf32> to vector<8xf32>
    %164 = vector.shape_cast %163 : vector<8xf32> to vector<8x1xf32>
    %cst_91 = arith.constant 4.000000e+00 : f32
    %165 = vector.broadcast %cst_91 : f32 to vector<8x1xf32>
    %166 = arith.divf %164, %165 : vector<8x1xf32>
    %167 = vector.broadcast %166 : vector<8x1xf32> to vector<8x4xf32>
    %168 = arith.subf %152, %167 : vector<8x4xf32>
    %cst_92 = arith.constant dense<0.000000e+00> : vector<8x8xf32>
    %169 = tpu.matmul %168, %168, %cst_92 {dimension_numbers = #tpu.dot_dimension_numbers<[1], [1], [0], [0], [0, 0, 1, 0], [], []>} : vector<8x4xf32>, vector<8x4xf32>, vector<8x8xf32> -> vector<8x8xf32>
    %cst_93 = arith.constant 0.333333343 : f32
    %170 = vector.broadcast %cst_93 : f32 to vector<8x8xf32>
    %171 = arith.mulf %169, %170 : vector<8x8xf32>
    %172 = arith.subf %162, %171 : vector<8x8xf32>
    %173 = math.absf %172 : vector<8x8xf32>
    %cst_94 = arith.constant dense<0xFF800000> : vector<8xf32>
    %174 = vector.multi_reduction <maximumf>, %173, %cst_94 [1] : vector<8x8xf32> to vector<8xf32>
    %175 = vector.shape_cast %174 : vector<8xf32> to vector<8x1xf32>
    %176 = vector.broadcast %175 : vector<8x1xf32> to vector<8x8xf32>
    %177 = arith.subf %173, %176 : vector<8x8xf32>
    %178 = math.exp %177 : vector<8x8xf32>
    %cst_95 = arith.constant dense<0.000000e+00> : vector<8xf32>
    %179 = vector.multi_reduction <add>, %178, %cst_95 [1] : vector<8x8xf32> to vector<8xf32>
    %180 = vector.shape_cast %179 : vector<8xf32> to vector<8x1xf32>
    %181 = vector.broadcast %180 : vector<8x1xf32> to vector<8x8xf32>
    %182 = arith.divf %178, %181 : vector<8x8xf32>
    %c0_96 = arith.constant 0 : index
    %c3 = arith.constant 3 : index
    %c0_97 = arith.constant 0 : index
    %c0_98 = arith.constant 0 : index
    %183 = vector.load %arg15[%c0_96, %c3, %c0_97, %c0_98] : memref<1x8x8x8xf32, #tpu.memory_space<vmem>>, vector<1x1x8x8xf32>
    %184 = vector.shape_cast %183 : vector<1x1x8x8xf32> to vector<8x8xf32>
    %185 = vector.shape_cast %182 : vector<8x8xf32> to vector<1x1x8x8xf32>
    tpu.vector_store %arg15[%c0_96, %c3, %c0_97, %c0_98], %185 {strides = array<i32>} : memref<1x8x8x8xf32, #tpu.memory_space<vmem>>, vector<1x1x8x8xf32>,
    %cst_99 = arith.constant dense<0.000000e+00> : vector<8x4xf32>
    %186 = tpu.matmul %182, %153, %cst_99 {dimension_numbers = #tpu.dot_dimension_numbers<[1], [0], [0], [1], [0, 0, 1, 1], [], []>} : vector<8x8xf32>, vector<8x4xf32>, vector<8x4xf32> -> vector<8x4xf32>
    %c3_100 = arith.constant 3 : index
    %c0_101 = arith.constant 0 : index
    %c0_102 = arith.constant 0 : index
    %187 = vector.load %arg6[%c3_100, %c0_101, %c0_102] : memref<8x4x32xf32, #tpu.memory_space<vmem>>, vector<1x4x32xf32>
    %188 = vector.shape_cast %187 : vector<1x4x32xf32> to vector<4x32xf32>
    %cst_103 = arith.constant dense<0.000000e+00> : vector<8x32xf32>
    %189 = tpu.matmul %186, %188, %cst_103 {dimension_numbers = #tpu.dot_dimension_numbers<[1], [0], [0], [1], [0, 0, 1, 1], [], []>} : vector<8x4xf32>, vector<4x32xf32>, vector<8x32xf32> -> vector<8x32xf32>
    %190 = arith.addf %150, %189 : vector<8x32xf32>
    %c0_104 = arith.constant 0 : index
    %c16 = arith.constant 16 : index
    %191 = vector.load %arg16[%c0_104, %c16] : memref<8x96xf32, #tpu.memory_space<vmem>>, vector<8x4xf32>
    %c0_105 = arith.constant 0 : index
    %c48 = arith.constant 48 : index
    %192 = vector.load %arg16[%c0_105, %c48] : memref<8x96xf32, #tpu.memory_space<vmem>>, vector<8x4xf32>
    %c0_106 = arith.constant 0 : index
    %c80 = arith.constant 80 : index
    %193 = vector.load %arg16[%c0_106, %c80] : memref<8x96xf32, #tpu.memory_space<vmem>>, vector<8x4xf32>
    %cst_107 = arith.constant dense<0.000000e+00> : vector<8xf32>
    %194 = vector.multi_reduction <add>, %191, %cst_107 [1] : vector<8x4xf32> to vector<8xf32>
    %195 = vector.shape_cast %194 : vector<8xf32> to vector<8x1xf32>
    %cst_108 = arith.constant 4.000000e+00 : f32
    %196 = vector.broadcast %cst_108 : f32 to vector<8x1xf32>
    %197 = arith.divf %195, %196 : vector<8x1xf32>
    %198 = vector.broadcast %197 : vector<8x1xf32> to vector<8x4xf32>
    %199 = arith.subf %191, %198 : vector<8x4xf32>
    %cst_109 = arith.constant dense<0.000000e+00> : vector<8x8xf32>
    %200 = tpu.matmul %199, %199, %cst_109 {dimension_numbers = #tpu.dot_dimension_numbers<[1], [1], [0], [0], [0, 0, 1, 0], [], []>} : vector<8x4xf32>, vector<8x4xf32>, vector<8x8xf32> -> vector<8x8xf32>
    %cst_110 = arith.constant 0.333333343 : f32
    %201 = vector.broadcast %cst_110 : f32 to vector<8x8xf32>
    %202 = arith.mulf %200, %201 : vector<8x8xf32>
    %cst_111 = arith.constant dense<0.000000e+00> : vector<8xf32>
    %203 = vector.multi_reduction <add>, %192, %cst_111 [1] : vector<8x4xf32> to vector<8xf32>
    %204 = vector.shape_cast %203 : vector<8xf32> to vector<8x1xf32>
    %cst_112 = arith.constant 4.000000e+00 : f32
    %205 = vector.broadcast %cst_112 : f32 to vector<8x1xf32>
    %206 = arith.divf %204, %205 : vector<8x1xf32>
    %207 = vector.broadcast %206 : vector<8x1xf32> to vector<8x4xf32>
    %208 = arith.subf %192, %207 : vector<8x4xf32>
    %cst_113 = arith.constant dense<0.000000e+00> : vector<8x8xf32>
    %209 = tpu.matmul %208, %208, %cst_113 {dimension_numbers = #tpu.dot_dimension_numbers<[1], [1], [0], [0], [0, 0, 1, 0], [], []>} : vector<8x4xf32>, vector<8x4xf32>, vector<8x8xf32> -> vector<8x8xf32>
    %cst_114 = arith.constant 0.333333343 : f32
    %210 = vector.broadcast %cst_114 : f32 to vector<8x8xf32>
    %211 = arith.mulf %209, %210 : vector<8x8xf32>
    %212 = arith.subf %202, %211 : vector<8x8xf32>
    %213 = math.absf %212 : vector<8x8xf32>
    %cst_115 = arith.constant dense<0xFF800000> : vector<8xf32>
    %214 = vector.multi_reduction <maximumf>, %213, %cst_115 [1] : vector<8x8xf32> to vector<8xf32>
    %215 = vector.shape_cast %214 : vector<8xf32> to vector<8x1xf32>
    %216 = vector.broadcast %215 : vector<8x1xf32> to vector<8x8xf32>
    %217 = arith.subf %213, %216 : vector<8x8xf32>
    %218 = math.exp %217 : vector<8x8xf32>
    %cst_116 = arith.constant dense<0.000000e+00> : vector<8xf32>
    %219 = vector.multi_reduction <add>, %218, %cst_116 [1] : vector<8x8xf32> to vector<8xf32>
    %220 = vector.shape_cast %219 : vector<8xf32> to vector<8x1xf32>
    %221 = vector.broadcast %220 : vector<8x1xf32> to vector<8x8xf32>
    %222 = arith.divf %218, %221 : vector<8x8xf32>
    %c0_117 = arith.constant 0 : index
    %c4_118 = arith.constant 4 : index
    %c0_119 = arith.constant 0 : index
    %c0_120 = arith.constant 0 : index
    %223 = vector.load %arg15[%c0_117, %c4_118, %c0_119, %c0_120] : memref<1x8x8x8xf32, #tpu.memory_space<vmem>>, vector<1x1x8x8xf32>
    %224 = vector.shape_cast %223 : vector<1x1x8x8xf32> to vector<8x8xf32>
    %225 = vector.shape_cast %222 : vector<8x8xf32> to vector<1x1x8x8xf32>
    tpu.vector_store %arg15[%c0_117, %c4_118, %c0_119, %c0_120], %225 {strides = array<i32>} : memref<1x8x8x8xf32, #tpu.memory_space<vmem>>, vector<1x1x8x8xf32>,
    %cst_121 = arith.constant dense<0.000000e+00> : vector<8x4xf32>
    %226 = tpu.matmul %222, %193, %cst_121 {dimension_numbers = #tpu.dot_dimension_numbers<[1], [0], [0], [1], [0, 0, 1, 1], [], []>} : vector<8x8xf32>, vector<8x4xf32>, vector<8x4xf32> -> vector<8x4xf32>
    %c4_122 = arith.constant 4 : index
    %c0_123 = arith.constant 0 : index
    %c0_124 = arith.constant 0 : index
    %227 = vector.load %arg6[%c4_122, %c0_123, %c0_124] : memref<8x4x32xf32, #tpu.memory_space<vmem>>, vector<1x4x32xf32>
    %228 = vector.shape_cast %227 : vector<1x4x32xf32> to vector<4x32xf32>
    %cst_125 = arith.constant dense<0.000000e+00> : vector<8x32xf32>
    %229 = tpu.matmul %226, %228, %cst_125 {dimension_numbers = #tpu.dot_dimension_numbers<[1], [0], [0], [1], [0, 0, 1, 1], [], []>} : vector<8x4xf32>, vector<4x32xf32>, vector<8x32xf32> -> vector<8x32xf32>
    %230 = arith.addf %190, %229 : vector<8x32xf32>
    %c0_126 = arith.constant 0 : index
    %c20 = arith.constant 20 : index
    %231 = vector.load %arg16[%c0_126, %c20] : memref<8x96xf32, #tpu.memory_space<vmem>>, vector<8x4xf32>
    %c0_127 = arith.constant 0 : index
    %c52 = arith.constant 52 : index
    %232 = vector.load %arg16[%c0_127, %c52] : memref<8x96xf32, #tpu.memory_space<vmem>>, vector<8x4xf32>
    %c0_128 = arith.constant 0 : index
    %c84 = arith.constant 84 : index
    %233 = vector.load %arg16[%c0_128, %c84] : memref<8x96xf32, #tpu.memory_space<vmem>>, vector<8x4xf32>
    %cst_129 = arith.constant dense<0.000000e+00> : vector<8xf32>
    %234 = vector.multi_reduction <add>, %231, %cst_129 [1] : vector<8x4xf32> to vector<8xf32>
    %235 = vector.shape_cast %234 : vector<8xf32> to vector<8x1xf32>
    %cst_130 = arith.constant 4.000000e+00 : f32
    %236 = vector.broadcast %cst_130 : f32 to vector<8x1xf32>
    %237 = arith.divf %235, %236 : vector<8x1xf32>
    %238 = vector.broadcast %237 : vector<8x1xf32> to vector<8x4xf32>
    %239 = arith.subf %231, %238 : vector<8x4xf32>
    %cst_131 = arith.constant dense<0.000000e+00> : vector<8x8xf32>
    %240 = tpu.matmul %239, %239, %cst_131 {dimension_numbers = #tpu.dot_dimension_numbers<[1], [1], [0], [0], [0, 0, 1, 0], [], []>} : vector<8x4xf32>, vector<8x4xf32>, vector<8x8xf32> -> vector<8x8xf32>
    %cst_132 = arith.constant 0.333333343 : f32
    %241 = vector.broadcast %cst_132 : f32 to vector<8x8xf32>
    %242 = arith.mulf %240, %241 : vector<8x8xf32>
    %cst_133 = arith.constant dense<0.000000e+00> : vector<8xf32>
    %243 = vector.multi_reduction <add>, %232, %cst_133 [1] : vector<8x4xf32> to vector<8xf32>
    %244 = vector.shape_cast %243 : vector<8xf32> to vector<8x1xf32>
    %cst_134 = arith.constant 4.000000e+00 : f32
    %245 = vector.broadcast %cst_134 : f32 to vector<8x1xf32>
    %246 = arith.divf %244, %245 : vector<8x1xf32>
    %247 = vector.broadcast %246 : vector<8x1xf32> to vector<8x4xf32>
    %248 = arith.subf %232, %247 : vector<8x4xf32>
    %cst_135 = arith.constant dense<0.000000e+00> : vector<8x8xf32>
    %249 = tpu.matmul %248, %248, %cst_135 {dimension_numbers = #tpu.dot_dimension_numbers<[1], [1], [0], [0], [0, 0, 1, 0], [], []>} : vector<8x4xf32>, vector<8x4xf32>, vector<8x8xf32> -> vector<8x8xf32>
    %cst_136 = arith.constant 0.333333343 : f32
    %250 = vector.broadcast %cst_136 : f32 to vector<8x8xf32>
    %251 = arith.mulf %249, %250 : vector<8x8xf32>
    %252 = arith.subf %242, %251 : vector<8x8xf32>
    %253 = math.absf %252 : vector<8x8xf32>
    %cst_137 = arith.constant dense<0xFF800000> : vector<8xf32>
    %254 = vector.multi_reduction <maximumf>, %253, %cst_137 [1] : vector<8x8xf32> to vector<8xf32>
    %255 = vector.shape_cast %254 : vector<8xf32> to vector<8x1xf32>
    %256 = vector.broadcast %255 : vector<8x1xf32> to vector<8x8xf32>
    %257 = arith.subf %253, %256 : vector<8x8xf32>
    %258 = math.exp %257 : vector<8x8xf32>
    %cst_138 = arith.constant dense<0.000000e+00> : vector<8xf32>
    %259 = vector.multi_reduction <add>, %258, %cst_138 [1] : vector<8x8xf32> to vector<8xf32>
    %260 = vector.shape_cast %259 : vector<8xf32> to vector<8x1xf32>
    %261 = vector.broadcast %260 : vector<8x1xf32> to vector<8x8xf32>
    %262 = arith.divf %258, %261 : vector<8x8xf32>
    %c0_139 = arith.constant 0 : index
    %c5 = arith.constant 5 : index
    %c0_140 = arith.constant 0 : index
    %c0_141 = arith.constant 0 : index
    %263 = vector.load %arg15[%c0_139, %c5, %c0_140, %c0_141] : memref<1x8x8x8xf32, #tpu.memory_space<vmem>>, vector<1x1x8x8xf32>
    %264 = vector.shape_cast %263 : vector<1x1x8x8xf32> to vector<8x8xf32>
    %265 = vector.shape_cast %262 : vector<8x8xf32> to vector<1x1x8x8xf32>
    tpu.vector_store %arg15[%c0_139, %c5, %c0_140, %c0_141], %265 {strides = array<i32>} : memref<1x8x8x8xf32, #tpu.memory_space<vmem>>, vector<1x1x8x8xf32>,
    %cst_142 = arith.constant dense<0.000000e+00> : vector<8x4xf32>
    %266 = tpu.matmul %262, %233, %cst_142 {dimension_numbers = #tpu.dot_dimension_numbers<[1], [0], [0], [1], [0, 0, 1, 1], [], []>} : vector<8x8xf32>, vector<8x4xf32>, vector<8x4xf32> -> vector<8x4xf32>
    %c5_143 = arith.constant 5 : index
    %c0_144 = arith.constant 0 : index
    %c0_145 = arith.constant 0 : index
    %267 = vector.load %arg6[%c5_143, %c0_144, %c0_145] : memref<8x4x32xf32, #tpu.memory_space<vmem>>, vector<1x4x32xf32>
    %268 = vector.shape_cast %267 : vector<1x4x32xf32> to vector<4x32xf32>
    %cst_146 = arith.constant dense<0.000000e+00> : vector<8x32xf32>
    %269 = tpu.matmul %266, %268, %cst_146 {dimension_numbers = #tpu.dot_dimension_numbers<[1], [0], [0], [1], [0, 0, 1, 1], [], []>} : vector<8x4xf32>, vector<4x32xf32>, vector<8x32xf32> -> vector<8x32xf32>
    %270 = arith.addf %230, %269 : vector<8x32xf32>
    %c0_147 = arith.constant 0 : index
    %c24 = arith.constant 24 : index
    %271 = vector.load %arg16[%c0_147, %c24] : memref<8x96xf32, #tpu.memory_space<vmem>>, vector<8x4xf32>
    %c0_148 = arith.constant 0 : index
    %c56 = arith.constant 56 : index
    %272 = vector.load %arg16[%c0_148, %c56] : memref<8x96xf32, #tpu.memory_space<vmem>>, vector<8x4xf32>
    %c0_149 = arith.constant 0 : index
    %c88 = arith.constant 88 : index
    %273 = vector.load %arg16[%c0_149, %c88] : memref<8x96xf32, #tpu.memory_space<vmem>>, vector<8x4xf32>
    %cst_150 = arith.constant dense<0.000000e+00> : vector<8xf32>
    %274 = vector.multi_reduction <add>, %271, %cst_150 [1] : vector<8x4xf32> to vector<8xf32>
    %275 = vector.shape_cast %274 : vector<8xf32> to vector<8x1xf32>
    %cst_151 = arith.constant 4.000000e+00 : f32
    %276 = vector.broadcast %cst_151 : f32 to vector<8x1xf32>
    %277 = arith.divf %275, %276 : vector<8x1xf32>
    %278 = vector.broadcast %277 : vector<8x1xf32> to vector<8x4xf32>
    %279 = arith.subf %271, %278 : vector<8x4xf32>
    %cst_152 = arith.constant dense<0.000000e+00> : vector<8x8xf32>
    %280 = tpu.matmul %279, %279, %cst_152 {dimension_numbers = #tpu.dot_dimension_numbers<[1], [1], [0], [0], [0, 0, 1, 0], [], []>} : vector<8x4xf32>, vector<8x4xf32>, vector<8x8xf32> -> vector<8x8xf32>
    %cst_153 = arith.constant 0.333333343 : f32
    %281 = vector.broadcast %cst_153 : f32 to vector<8x8xf32>
    %282 = arith.mulf %280, %281 : vector<8x8xf32>
    %cst_154 = arith.constant dense<0.000000e+00> : vector<8xf32>
    %283 = vector.multi_reduction <add>, %272, %cst_154 [1] : vector<8x4xf32> to vector<8xf32>
    %284 = vector.shape_cast %283 : vector<8xf32> to vector<8x1xf32>
    %cst_155 = arith.constant 4.000000e+00 : f32
    %285 = vector.broadcast %cst_155 : f32 to vector<8x1xf32>
    %286 = arith.divf %284, %285 : vector<8x1xf32>
    %287 = vector.broadcast %286 : vector<8x1xf32> to vector<8x4xf32>
    %288 = arith.subf %272, %287 : vector<8x4xf32>
    %cst_156 = arith.constant dense<0.000000e+00> : vector<8x8xf32>
    %289 = tpu.matmul %288, %288, %cst_156 {dimension_numbers = #tpu.dot_dimension_numbers<[1], [1], [0], [0], [0, 0, 1, 0], [], []>} : vector<8x4xf32>, vector<8x4xf32>, vector<8x8xf32> -> vector<8x8xf32>
    %cst_157 = arith.constant 0.333333343 : f32
    %290 = vector.broadcast %cst_157 : f32 to vector<8x8xf32>
    %291 = arith.mulf %289, %290 : vector<8x8xf32>
    %292 = arith.subf %282, %291 : vector<8x8xf32>
    %293 = math.absf %292 : vector<8x8xf32>
    %cst_158 = arith.constant dense<0xFF800000> : vector<8xf32>
    %294 = vector.multi_reduction <maximumf>, %293, %cst_158 [1] : vector<8x8xf32> to vector<8xf32>
    %295 = vector.shape_cast %294 : vector<8xf32> to vector<8x1xf32>
    %296 = vector.broadcast %295 : vector<8x1xf32> to vector<8x8xf32>
    %297 = arith.subf %293, %296 : vector<8x8xf32>
    %298 = math.exp %297 : vector<8x8xf32>
    %cst_159 = arith.constant dense<0.000000e+00> : vector<8xf32>
    %299 = vector.multi_reduction <add>, %298, %cst_159 [1] : vector<8x8xf32> to vector<8xf32>
    %300 = vector.shape_cast %299 : vector<8xf32> to vector<8x1xf32>
    %301 = vector.broadcast %300 : vector<8x1xf32> to vector<8x8xf32>
    %302 = arith.divf %298, %301 : vector<8x8xf32>
    %c0_160 = arith.constant 0 : index
    %c6 = arith.constant 6 : index
    %c0_161 = arith.constant 0 : index
    %c0_162 = arith.constant 0 : index
    %303 = vector.load %arg15[%c0_160, %c6, %c0_161, %c0_162] : memref<1x8x8x8xf32, #tpu.memory_space<vmem>>, vector<1x1x8x8xf32>
    %304 = vector.shape_cast %303 : vector<1x1x8x8xf32> to vector<8x8xf32>
    %305 = vector.shape_cast %302 : vector<8x8xf32> to vector<1x1x8x8xf32>
    tpu.vector_store %arg15[%c0_160, %c6, %c0_161, %c0_162], %305 {strides = array<i32>} : memref<1x8x8x8xf32, #tpu.memory_space<vmem>>, vector<1x1x8x8xf32>,
    %cst_163 = arith.constant dense<0.000000e+00> : vector<8x4xf32>
    %306 = tpu.matmul %302, %273, %cst_163 {dimension_numbers = #tpu.dot_dimension_numbers<[1], [0], [0], [1], [0, 0, 1, 1], [], []>} : vector<8x8xf32>, vector<8x4xf32>, vector<8x4xf32> -> vector<8x4xf32>
    %c6_164 = arith.constant 6 : index
    %c0_165 = arith.constant 0 : index
    %c0_166 = arith.constant 0 : index
    %307 = vector.load %arg6[%c6_164, %c0_165, %c0_166] : memref<8x4x32xf32, #tpu.memory_space<vmem>>, vector<1x4x32xf32>
    %308 = vector.shape_cast %307 : vector<1x4x32xf32> to vector<4x32xf32>
    %cst_167 = arith.constant dense<0.000000e+00> : vector<8x32xf32>
    %309 = tpu.matmul %306, %308, %cst_167 {dimension_numbers = #tpu.dot_dimension_numbers<[1], [0], [0], [1], [0, 0, 1, 1], [], []>} : vector<8x4xf32>, vector<4x32xf32>, vector<8x32xf32> -> vector<8x32xf32>
    %310 = arith.addf %270, %309 : vector<8x32xf32>
    %c0_168 = arith.constant 0 : index
    %c28 = arith.constant 28 : index
    %311 = vector.load %arg16[%c0_168, %c28] : memref<8x96xf32, #tpu.memory_space<vmem>>, vector<8x4xf32>
    %c0_169 = arith.constant 0 : index
    %c60 = arith.constant 60 : index
    %312 = vector.load %arg16[%c0_169, %c60] : memref<8x96xf32, #tpu.memory_space<vmem>>, vector<8x4xf32>
    %c0_170 = arith.constant 0 : index
    %c92 = arith.constant 92 : index
    %313 = vector.load %arg16[%c0_170, %c92] : memref<8x96xf32, #tpu.memory_space<vmem>>, vector<8x4xf32>
    %cst_171 = arith.constant dense<0.000000e+00> : vector<8xf32>
    %314 = vector.multi_reduction <add>, %311, %cst_171 [1] : vector<8x4xf32> to vector<8xf32>
    %315 = vector.shape_cast %314 : vector<8xf32> to vector<8x1xf32>
    %cst_172 = arith.constant 4.000000e+00 : f32
    %316 = vector.broadcast %cst_172 : f32 to vector<8x1xf32>
    %317 = arith.divf %315, %316 : vector<8x1xf32>
    %318 = vector.broadcast %317 : vector<8x1xf32> to vector<8x4xf32>
    %319 = arith.subf %311, %318 : vector<8x4xf32>
    %cst_173 = arith.constant dense<0.000000e+00> : vector<8x8xf32>
    %320 = tpu.matmul %319, %319, %cst_173 {dimension_numbers = #tpu.dot_dimension_numbers<[1], [1], [0], [0], [0, 0, 1, 0], [], []>} : vector<8x4xf32>, vector<8x4xf32>, vector<8x8xf32> -> vector<8x8xf32>
    %cst_174 = arith.constant 0.333333343 : f32
    %321 = vector.broadcast %cst_174 : f32 to vector<8x8xf32>
    %322 = arith.mulf %320, %321 : vector<8x8xf32>
    %cst_175 = arith.constant dense<0.000000e+00> : vector<8xf32>
    %323 = vector.multi_reduction <add>, %312, %cst_175 [1] : vector<8x4xf32> to vector<8xf32>
    %324 = vector.shape_cast %323 : vector<8xf32> to vector<8x1xf32>
    %cst_176 = arith.constant 4.000000e+00 : f32
    %325 = vector.broadcast %cst_176 : f32 to vector<8x1xf32>
    %326 = arith.divf %324, %325 : vector<8x1xf32>
    %327 = vector.broadcast %326 : vector<8x1xf32> to vector<8x4xf32>
    %328 = arith.subf %312, %327 : vector<8x4xf32>
    %cst_177 = arith.constant dense<0.000000e+00> : vector<8x8xf32>
    %329 = tpu.matmul %328, %328, %cst_177 {dimension_numbers = #tpu.dot_dimension_numbers<[1], [1], [0], [0], [0, 0, 1, 0], [], []>} : vector<8x4xf32>, vector<8x4xf32>, vector<8x8xf32> -> vector<8x8xf32>
    %cst_178 = arith.constant 0.333333343 : f32
    %330 = vector.broadcast %cst_178 : f32 to vector<8x8xf32>
    %331 = arith.mulf %329, %330 : vector<8x8xf32>
    %332 = arith.subf %322, %331 : vector<8x8xf32>
    %333 = math.absf %332 : vector<8x8xf32>
    %cst_179 = arith.constant dense<0xFF800000> : vector<8xf32>
    %334 = vector.multi_reduction <maximumf>, %333, %cst_179 [1] : vector<8x8xf32> to vector<8xf32>
    %335 = vector.shape_cast %334 : vector<8xf32> to vector<8x1xf32>
    %336 = vector.broadcast %335 : vector<8x1xf32> to vector<8x8xf32>
    %337 = arith.subf %333, %336 : vector<8x8xf32>
    %338 = math.exp %337 : vector<8x8xf32>
    %cst_180 = arith.constant dense<0.000000e+00> : vector<8xf32>
    %339 = vector.multi_reduction <add>, %338, %cst_180 [1] : vector<8x8xf32> to vector<8xf32>
    %340 = vector.shape_cast %339 : vector<8xf32> to vector<8x1xf32>
    %341 = vector.broadcast %340 : vector<8x1xf32> to vector<8x8xf32>
    %342 = arith.divf %338, %341 : vector<8x8xf32>
    %c0_181 = arith.constant 0 : index
    %c7 = arith.constant 7 : index
    %c0_182 = arith.constant 0 : index
    %c0_183 = arith.constant 0 : index
    %343 = vector.load %arg15[%c0_181, %c7, %c0_182, %c0_183] : memref<1x8x8x8xf32, #tpu.memory_space<vmem>>, vector<1x1x8x8xf32>
    %344 = vector.shape_cast %343 : vector<1x1x8x8xf32> to vector<8x8xf32>
    %345 = vector.shape_cast %342 : vector<8x8xf32> to vector<1x1x8x8xf32>
    tpu.vector_store %arg15[%c0_181, %c7, %c0_182, %c0_183], %345 {strides = array<i32>} : memref<1x8x8x8xf32, #tpu.memory_space<vmem>>, vector<1x1x8x8xf32>,
    %cst_184 = arith.constant dense<0.000000e+00> : vector<8x4xf32>
    %346 = tpu.matmul %342, %313, %cst_184 {dimension_numbers = #tpu.dot_dimension_numbers<[1], [0], [0], [1], [0, 0, 1, 1], [], []>} : vector<8x8xf32>, vector<8x4xf32>, vector<8x4xf32> -> vector<8x4xf32>
    %c7_185 = arith.constant 7 : index
    %c0_186 = arith.constant 0 : index
    %c0_187 = arith.constant 0 : index
    %347 = vector.load %arg6[%c7_185, %c0_186, %c0_187] : memref<8x4x32xf32, #tpu.memory_space<vmem>>, vector<1x4x32xf32>
    %348 = vector.shape_cast %347 : vector<1x4x32xf32> to vector<4x32xf32>
    %cst_188 = arith.constant dense<0.000000e+00> : vector<8x32xf32>
    %349 = tpu.matmul %346, %348, %cst_188 {dimension_numbers = #tpu.dot_dimension_numbers<[1], [0], [0], [1], [0, 0, 1, 1], [], []>} : vector<8x4xf32>, vector<4x32xf32>, vector<8x32xf32> -> vector<8x32xf32>
    %350 = arith.addf %310, %349 : vector<8x32xf32>
    %c0_189 = arith.constant 0 : index
    %c0_190 = arith.constant 0 : index
    %351 = vector.load %arg7[%c0_189, %c0_190] : memref<1x32xf32, #tpu.memory_space<vmem>>, vector<1x32xf32>
    %352 = vector.broadcast %351 : vector<1x32xf32> to vector<8x32xf32>
    %353 = arith.addf %350, %352 : vector<8x32xf32>
    %354 = arith.addf %1, %353 : vector<8x32xf32>
    %c0_191 = arith.constant 0 : index
    %c0_192 = arith.constant 0 : index
    %355 = vector.load %arg8[%c0_191, %c0_192] : memref<1x32xf32, #tpu.memory_space<vmem>>, vector<1x32xf32>
    %c0_193 = arith.constant 0 : index
    %c0_194 = arith.constant 0 : index
    %356 = vector.load %arg9[%c0_193, %c0_194] : memref<1x32xf32, #tpu.memory_space<vmem>>, vector<1x32xf32>
    %cst_195 = arith.constant dense<0.000000e+00> : vector<8xf32>
    %357 = vector.multi_reduction <add>, %354, %cst_195 [1] : vector<8x32xf32> to vector<8xf32>
    %358 = vector.shape_cast %357 : vector<8xf32> to vector<8x1xf32>
    %cst_196 = arith.constant 3.200000e+01 : f32
    %359 = vector.broadcast %cst_196 : f32 to vector<8x1xf32>
    %360 = arith.divf %358, %359 : vector<8x1xf32>
    %361 = vector.broadcast %360 : vector<8x1xf32> to vector<8x32xf32>
    %362 = arith.subf %354, %361 : vector<8x32xf32>
    %363 = arith.mulf %362, %362 : vector<8x32xf32>
    %cst_197 = arith.constant dense<0.000000e+00> : vector<8xf32>
    %364 = vector.multi_reduction <add>, %363, %cst_197 [1] : vector<8x32xf32> to vector<8xf32>
    %365 = vector.shape_cast %364 : vector<8xf32> to vector<8x1xf32>
    %cst_198 = arith.constant 3.200000e+01 : f32
    %366 = vector.broadcast %cst_198 : f32 to vector<8x1xf32>
    %367 = arith.divf %365, %366 : vector<8x1xf32>
    %cst_199 = arith.constant 9.99999974E-6 : f32
    %368 = vector.broadcast %cst_199 : f32 to vector<8x1xf32>
    %369 = arith.addf %367, %368 : vector<8x1xf32>
    %370 = math.rsqrt %369 : vector<8x1xf32>
    %371 = vector.broadcast %370 : vector<8x1xf32> to vector<8x32xf32>
    %372 = arith.mulf %362, %371 : vector<8x32xf32>
    %373 = vector.broadcast %355 : vector<1x32xf32> to vector<8x32xf32>
    %374 = arith.mulf %372, %373 : vector<8x32xf32>
    %375 = vector.broadcast %356 : vector<1x32xf32> to vector<8x32xf32>
    %376 = arith.addf %374, %375 : vector<8x32xf32>
    %c0_200 = arith.constant 0 : index
    %c0_201 = arith.constant 0 : index
    %377 = vector.load %arg10[%c0_200, %c0_201] : memref<32x64xf32, #tpu.memory_space<vmem>>, vector<32x64xf32>
    %cst_202 = arith.constant dense<0.000000e+00> : vector<8x64xf32>
    %378 = tpu.matmul %376, %377, %cst_202 {dimension_numbers = #tpu.dot_dimension_numbers<[1], [0], [0], [1], [0, 0, 1, 1], [], []>} : vector<8x32xf32>, vector<32x64xf32>, vector<8x64xf32> -> vector<8x64xf32>
    %c0_203 = arith.constant 0 : index
    %c0_204 = arith.constant 0 : index
    %379 = vector.load %arg11[%c0_203, %c0_204] : memref<1x64xf32, #tpu.memory_space<vmem>>, vector<1x64xf32>
    %380 = vector.broadcast %379 : vector<1x64xf32> to vector<8x64xf32>
    %381 = arith.addf %378, %380 : vector<8x64xf32>
    %cst_205 = arith.constant 5.000000e-01 : f32
    %382 = vector.broadcast %cst_205 : f32 to vector<8x64xf32>
    %383 = arith.mulf %382, %381 : vector<8x64xf32>
    %cst_206 = arith.constant 0.707106769 : f32
    %384 = vector.broadcast %cst_206 : f32 to vector<8x64xf32>
    %385 = arith.mulf %381, %384 : vector<8x64xf32>
    %386 = math.erf %385 : vector<8x64xf32>
    %cst_207 = arith.constant 1.000000e+00 : f32
    %387 = vector.broadcast %cst_207 : f32 to vector<8x64xf32>
    %388 = arith.addf %387, %386 : vector<8x64xf32>
    %389 = arith.mulf %383, %388 : vector<8x64xf32>
    %c0_208 = arith.constant 0 : index
    %c0_209 = arith.constant 0 : index
    %390 = vector.load %arg12[%c0_208, %c0_209] : memref<64x32xf32, #tpu.memory_space<vmem>>, vector<64x32xf32>
    %cst_210 = arith.constant dense<0.000000e+00> : vector<8x32xf32>
    %391 = tpu.matmul %389, %390, %cst_210 {dimension_numbers = #tpu.dot_dimension_numbers<[1], [0], [0], [1], [0, 0, 1, 1], [], []>} : vector<8x64xf32>, vector<64x32xf32>, vector<8x32xf32> -> vector<8x32xf32>
    %c0_211 = arith.constant 0 : index
    %c0_212 = arith.constant 0 : index
    %392 = vector.load %arg13[%c0_211, %c0_212] : memref<1x32xf32, #tpu.memory_space<vmem>>, vector<1x32xf32>
    %393 = vector.broadcast %392 : vector<1x32xf32> to vector<8x32xf32>
    %394 = arith.addf %391, %393 : vector<8x32xf32>
    %395 = arith.addf %376, %394 : vector<8x32xf32>
    %c0_213 = arith.constant 0 : index
    %c0_214 = arith.constant 0 : index
    %c0_215 = arith.constant 0 : index
    %396 = vector.load %arg14[%c0_213, %c0_214, %c0_215] : memref<1x8x32xf32, #tpu.memory_space<vmem>>, vector<1x8x32xf32>
    %397 = vector.shape_cast %396 : vector<1x8x32xf32> to vector<8x32xf32>
    %398 = vector.shape_cast %395 : vector<8x32xf32> to vector<1x8x32xf32>
    tpu.vector_store %arg14[%c0_213, %c0_214, %c0_215], %398 {strides = array<i32>} : memref<1x8x32xf32, #tpu.memory_space<vmem>>, vector<1x8x32xf32>,
    return
  }
  func.func @transform_0(%arg0: i32) -> (i32, i32, i32) {
    %c0_i32 = arith.constant 0 : i32
    %c0_i32_0 = arith.constant 0 : i32
    %c0_i32_1 = arith.constant 0 : i32
    return %arg0, %c0_i32, %c0_i32_0 : i32, i32, i32
  }
  func.func @transform_1(%arg0: i32) -> (i32, i32) {
    %c0_i32 = arith.constant 0 : i32
    %c0_i32_0 = arith.constant 0 : i32
    %c0_i32_1 = arith.constant 0 : i32
    return %c0_i32, %c0_i32_0 : i32, i32
  }
  func.func @transform_2(%arg0: i32) -> (i32, i32) {
    %c0_i32 = arith.constant 0 : i32
    %c0_i32_0 = arith.constant 0 : i32
    %c0_i32_1 = arith.constant 0 : i32
    return %c0_i32, %c0_i32_0 : i32, i32
  }
  func.func @transform_3(%arg0: i32) -> (i32, i32) {
    %c0_i32 = arith.constant 0 : i32
    %c0_i32_0 = arith.constant 0 : i32
    %c0_i32_1 = arith.constant 0 : i32
    return %c0_i32, %c0_i32_0 : i32, i32
  }
  func.func @transform_4(%arg0: i32) -> (i32, i32) {
    %c0_i32 = arith.constant 0 : i32
    %c0_i32_0 = arith.constant 0 : i32
    %c0_i32_1 = arith.constant 0 : i32
    return %c0_i32, %c0_i32_0 : i32, i32
  }
  func.func @transform_5(%arg0: i32) -> (i32, i32, i32) {
    %c0_i32 = arith.constant 0 : i32
    %c0_i32_0 = arith.constant 0 : i32
    %c0_i32_1 = arith.constant 0 : i32
    %c0_i32_2 = arith.constant 0 : i32
    return %c0_i32, %c0_i32_0, %c0_i32_1 : i32, i32, i32
  }
  func.func @transform_6(%arg0: i32) -> (i32, i32) {
    %c0_i32 = arith.constant 0 : i32
    %c0_i32_0 = arith.constant 0 : i32
    %c0_i32_1 = arith.constant 0 : i32
    return %c0_i32, %c0_i32_0 : i32, i32
  }
  func.func @transform_7(%arg0: i32) -> (i32, i32) {
    %c0_i32 = arith.constant 0 : i32
    %c0_i32_0 = arith.constant 0 : i32
    %c0_i32_1 = arith.constant 0 : i32
    return %c0_i32, %c0_i32_0 : i32, i32
  }
  func.func @transform_8(%arg0: i32) -> (i32, i32) {
    %c0_i32 = arith.constant 0 : i32
    %c0_i32_0 = arith.constant 0 : i32
    %c0_i32_1 = arith.constant 0 : i32
    return %c0_i32, %c0_i32_0 : i32, i32
  }
  func.func @transform_9(%arg0: i32) -> (i32, i32) {
    %c0_i32 = arith.constant 0 : i32
    %c0_i32_0 = arith.constant 0 : i32
    %c0_i32_1 = arith.constant 0 : i32
    return %c0_i32, %c0_i32_0 : i32, i32
  }
  func.func @transform_10(%arg0: i32) -> (i32, i32) {
    %c0_i32 = arith.constant 0 : i32
    %c0_i32_0 = arith.constant 0 : i32
    %c0_i32_1 = arith.constant 0 : i32
    return %c0_i32, %c0_i32_0 : i32, i32
  }
  func.func @transform_11(%arg0: i32) -> (i32, i32) {
    %c0_i32 = arith.constant 0 : i32
    %c0_i32_0 = arith.constant 0 : i32
    %c0_i32_1 = arith.constant 0 : i32
    return %c0_i32, %c0_i32_0 : i32, i32
  }
  func.func @transform_12(%arg0: i32) -> (i32, i32) {
    %c0_i32 = arith.constant 0 : i32
    %c0_i32_0 = arith.constant 0 : i32
    %c0_i32_1 = arith.constant 0 : i32
    return %c0_i32, %c0_i32_0 : i32, i32
  }
  func.func @transform_13(%arg0: i32) -> (i32, i32, i32) {
    %c0_i32 = arith.constant 0 : i32
    %c0_i32_0 = arith.constant 0 : i32
    %c0_i32_1 = arith.constant 0 : i32
    return %arg0, %c0_i32, %c0_i32_0 : i32, i32, i32
  }
  func.func @transform_14(%arg0: i32) -> (i32, i32, i32, i32) {
    %c0_i32 = arith.constant 0 : i32
    %c0_i32_0 = arith.constant 0 : i32
    %c0_i32_1 = arith.constant 0 : i32
    %c0_i32_2 = arith.constant 0 : i32
    return %arg0, %c0_i32, %c0_i32_0, %c0_i32_1 : i32, i32, i32, i32
  }
}

</mosaic_0001>

<bundles_post_ra>
// kernel: riemmanian_encoder_layer.1
= control target key start
LH: loop header
LB: loop body
LE: loop exit
PB: predicated region body
PF: predicated region fallthrough
CT: control target
= control target key end

     0   :  { %s3274_s0 = inlined_call_operand.hbm [shape: f32[2,8,32], index: 0, kind: input, shape index: {}]   ;;  %s3275_s1 = inlined_call_operand.vmem [shape: f32[1,32], index: 1, kind: input, shape index: {}, may-alias: {1,7}]   ;;  %s3276_s2 = inlined_call_operand.vmem [shape: f32[1,32], index: 2, kind: input, shape index: {}, may-alias: {2,8}]   ;;  %s3277_s3 = inlined_call_operand.hbm [shape: f32[32,96], index: 3, kind: input, shape index: {}]   ;;  %s3278_s4 = inlined_call_operand.vmem [shape: f32[1,96], index: 4, kind: input, shape index: {}]   ;;  %s3279_s5 = inlined_call_operand.hbm [shape: f32[8,4,32], index: 5, kind: input, shape index: {}]   ;;  %s3280_s6 = inlined_call_operand.vmem [shape: f32[1,32], index: 6, kind: input, shape index: {}]   ;;  %s3281_s7 = inlined_call_operand.vmem [shape: f32[1,32], index: 7, kind: input, shape index: {}, may-alias: {1,7}]   ;;  %s3282_s8 = inlined_call_operand.vmem [shape: f32[1,32], index: 8, kind: input, shape index: {}, may-alias: {2,8}]   ;;  %s3283_s9 = inlined_call_operand.hbm [shape: f32[32,64], index: 9, kind: input, shape index: {}]   ;;  %s3284_s10 = inlined_call_operand.vmem [shape: f32[1,64], index: 10, kind: input, shape index: {}]   ;;  %s3285_s11 = inlined_call_operand.hbm [shape: f32[64,32], index: 11, kind: input, shape index: {}]   ;;  %s3286_s12 = inlined_call_operand.vmem [shape: f32[1,32], index: 12, kind: input, shape index: {}]   ;;  %s3287_s13 = inlined_call_operand.hbm [shape: f32[2,8,32], index: 13, kind: output, shape index: {0}]   ;;  %s3288_s14 = inlined_call_operand.hbm [shape: f32[2,8,8,8], index: 14, kind: output, shape index: {1}]  }
   0x1   :  { %3295 = sst [smem:[#allocation23_spill]] %s3274_s0 }
   0x2   :  { %3296 = sst [smem:[#allocation24_spill]] %s3275_s1 }
   0x3   :  { %3297 = sst [smem:[#allocation25_spill]] %s3277_s3 }
   0x4   :  { %3298 = sst [smem:[#allocation26_spill]] %s3279_s5 }
   0x5   :  { %3299 = sst [smem:[#allocation27_spill]] %s3283_s9 }
   0x6   :  { %3300 = sst [smem:[#allocation28_spill]] %s3285_s11 }
   0x7   :  { %3301 = sst [smem:[#allocation29_spill]] %s3286_s12 }
   0x8   :  { %3302 = sst [smem:[#allocation30_spill]] %s3287_s13 }
   0x9   :  { %20 = vsyncpa [#allocation4], 0 }
   0xa   :  { %22 = vsyncpa [#allocation4 + $0x1], 0 }
   0xb   :  { %23 = vsyncpa [#allocation7], 0 }
   0xc   :  { %24 = vsyncpa [#allocation10], 0 }
   0xd   :  { %25 = vsyncpa [#allocation5], 0 }
   0xe   :  { %27 = vsyncpa [#allocation5 + $0x1], 0 }
   0xf   :  { %28 = vsyncpa [#allocation14], 0 }
  0x10   :  { %30 = vsyncpa [#allocation14 + $0x1], 0  ;;  %s2825_s29 = smov 0   ;;  %s2827_s30 = smov 0  }
  0x11   :  { %s2829_s15 = smov 0   ;;  %s2831_s16 = smov 0  }
  0x12 LB: > { %3303 = sst [smem:[#allocation20_spill]] %s2709_s15  ;;  %s2849_s20 = sadd.s32 4294967295, %s2713_s16   ;;  %s2713_s16 = sphi %s2831_s16, %s3324_s16   ;;  %s2709_s15 = sphi %s2829_s15, %s3326_s15   ;;  %s2705_s30 = sphi %s2827_s30, %s3328_s30   ;;  %s2701_s29 = sphi %s2825_s29, %s3327_s29  }
  0x13   : > { %s3304_s3 = sld [smem:[#allocation25_spill]]  ;;  %p2192_p0 = scmp.ge.s32.totalorder %s2713_s16, 1 }
  0x14   : > { %p57_p1 = scmp.eq.s32.totalorder %s2849_s20, 0  ;;  %p371_p2 = scmp.lt.s32.totalorder %s2713_s16, 3 }
  0x15   : > { %s2715_s22 = smov [#allocation6]   ;;  %s3306_s9 = sld [smem:[#allocation27_spill]] }
  0x16   : > { %p2854_p3 = pnand %p2192_p0, %p371_p2  ;;  %s390_s23 = sshll.u32 %s2715_s22, 4  ;;  %s391_s23 = int_to_ptr.vmem [resolvable:$true] %s390_s23 }
  0x17   : > { %s3308_s5 = sld [smem:[#allocation26_spill]]  ;;  %s2716_s22 = smov [#allocation9]  }
  0x18   : > { %p2305_p4 = pneg %p2854_p3  ;;  %s2717_s13 = smov 128  }
  0x19   : > { %s388_s19 = sshll.u32 %s3304_s3, 4  ;;  %s430_s3 = sshll.u32 %s2716_s22, 4  ;;  %s389_s19 = int_to_ptr.hbm [resolvable:$true] %s388_s19  ;;  %s431_s3 = int_to_ptr.vmem [resolvable:$true] %s430_s3 }
  0x1a   : > { %p2866_p6 = pnand %p2305_p4, %p57_p1  ;;  %s2718_s12 = smov 8  }
  0x1b   : > { %s428_s26 = sshll.u32 %s3306_s9, 4  ;;  %s2719_s24 = smov [#allocation8]   ;;  %s429_s26 = int_to_ptr.hbm [resolvable:$true] %s428_s26 }
  0x1c   : > { %2308 = dma.hbm_to_vmem [thread:$0]  (!%p2866_p6), %s389_s19, 512, %s391_s23, [#allocation7], %s2717_s13, %s2717_s13, %s2718_s12  }
  0x1d   : > { %s405_s18 = sshll.u32 %s3308_s5, 4  ;;  %s407_s25 = sshll.u32 %s2719_s24, 4  ;;  %s406_s18 = int_to_ptr.hbm [resolvable:$true] %s405_s18  ;;  %s408_s25 = int_to_ptr.vmem [resolvable:$true] %s407_s25 }
  0x1e   : > { %2314 = dma.hbm_to_vmem [thread:$0]  (!%p2866_p6), %s429_s26, 512, %s431_s3, [#allocation10], %s2717_s13, %s2717_s13, %s2718_s12  }
  0x1f   : > { %s3309_s11 = sld [smem:[#allocation28_spill]]  ;;  %s2720_s19 = smov 64  }
  0x20   : > { %s2721_s23 = smov 4   ;;  %s2722_s3 = smov [#allocation11]  }
  0x21   : > { %2311 = dma.hbm_to_vmem [thread:$0]  (!%p2866_p6), %s406_s18, 512, %s408_s25, [#allocation7], %s2720_s19, %s2720_s19, %s2721_s23  }
  0x22   : > { %s447_s26 = sshll.u32 %s2722_s3, 4  ;;  %s2191_s24 = sadd.s32 4294967294, %s2713_s16   ;;  %s448_s26 = int_to_ptr.vmem [resolvable:$true] %s447_s26 }
  0x23   : > { %s2886_s28 = sadd.s32 1, %s2713_s16   ;;  %s43_s5 = sadd.s32 1, %s2709_s15 }
  0x24   : > { %3310 = sst [smem:[#allocation21_spill]] %s2886_s28  ;;  %s40_s17 = ssub.s32 %s2713_s16, %s2886_s28 }
  0x25   : > { %s445_s22 = sshll.u32 %s3309_s11, 4  ;;  %p41_p7 = scmp.eq.s32.totalorder %s40_s17, 0  ;;  %s446_s22 = int_to_ptr.hbm [resolvable:$true] %s445_s22 }
  0x26   : > { %2317 = dma.hbm_to_vmem [thread:$0]  (!%p2866_p6), %s446_s22, 1024, %s448_s26, [#allocation10], %s2717_s13, %s2717_s13, %s2718_s12  }
  0x27   : > { %p50_p8 = scmp.ne.s32.totalorder %s2709_s15, %s2705_s30  ;;  %p51_p9 = scmp.eq.s32.totalorder %s2713_s16, 0 }
  0x28   : > { %p56_p10 = scmp.ne.s32.totalorder %s2705_s30, %s2701_s29  ;;  %p332_p13 = scmp.eq.s32.totalorder %s2849_s20, 1 }
  0x29   : > { %s2897_s18 = scalar_select %p41_p7, %s2709_s15, %s43_s5  }
  0x2a   : > { %p2899_p11 = por %p51_p9, %p50_p8  ;;  %p2905_p12 = por %p57_p1, %p56_p10 }
  0x2b   : > { %3311 = sst [smem:[#allocation22_spill]] %s2897_s18  ;;  %p338_p0 = scmp.eq.s32.totalorder %s2191_s24, 1 }
  0x2c   : > { %p2333_p2 = scmp.lt.s32.totalorder %s2713_s16, 2  ;;  %s464_s13 = sand.u32 1, %s2709_s15  }
  0x2d   : > { %p2912_p4 = por %p332_p13, %p50_p8  ;;  %p2916_p6 = por %p338_p0, %p56_p10 }
  0x2e   : > { %s2198_s22 = sshll.u32 %s464_s13, 3  ;;  %s2199_s19 = sshll.u32 %s2713_s16, 3 }
  0x2f   : > { %s3316_s0 = sld [smem:[#allocation23_spill]]  ;;  %s468_s17 = scalar_lea.vmem [#allocation3], %s2198_s22 }
  0x30   : > { %s476_s9 = sshll.u32 %s468_s17, 4  ;;  %p2926_p7 = pnand %p2333_p2, %p2899_p11  ;;  %s477_s9 = int_to_ptr.vmem [resolvable:$true] %s476_s9 }
  0x31   : > { %s465_s18 = scalar_lea.sflag [#allocation4], %s464_s13 }
  0x32   : > { %p2581_p9 = pneg %p2926_p7 }
  0x35   : > { %s472_s26 = scalar_lea.hbm %s3316_s0, %s2199_s19  ;;  %s2584_s23 = scalar_lea.hbm %s3316_s0, 16 }
  0x36   : > { %s474_s11 = sshll.u32 %s472_s26, 4  ;;  %s475_s11 = int_to_ptr.hbm [resolvable:$true] %s474_s11 }
  0x37   : > { %s2577_s15 = sshra.s32 %s475_s11, 4  ;;  %s2578_s15 = int_to_ptr.hbm [resolvable:$true] %s2577_s15 }
  0x38   : > { %s2579_s28 = scalar_lea.hbm %s2578_s15, 8  ;;  %p2585_p11 = scmp.lt.s32.totalorder %s2578_s15, %s3316_s0 }
  0x39   : > { %p2580_p8 = scmp.ne.s32.totalorder %s2578_s15, %s2579_s28  ;;  %p2586_p0 = scmp.lt.s32.totalorder %s2584_s23, %s2579_s28 }
  0x3b   : > { %p2582_p10 = pnand %p2581_p9, %p2580_p8  ;;  %p2587_p2 = por %p2586_p0, %p2585_p11 }
  0x3d   : > { %p2583_p13 = pneg %p2582_p10 }
  0x3f   : > { %p2588_p5 = pnand %p2587_p2, %p2583_p13 }
  0x41   : > { %2591 = shalt.err (!%p2588_p5)
}
  0x42   : > { %2321 = dma.hbm_to_vmem [thread:$0]  (!%p2926_p7), %s475_s11, 128, %s477_s9, %s465_s18  }
  0x43   : > { %485 = sbr.rel (%p2854_p3) target bundleno = 2946 (0xb82), region = 72  ;;  %s2943_s13 = sand.u32 (!%p2854_p3), 1, %s2705_s30  }
  0x44   : > { %s3293_s26 = sshll.u32 (!%p2854_p3), %s2943_s13, 3  ;;  %s488_s17 = scalar_lea.sflag (!%p2854_p3), [#allocation4], %s2943_s13 }
  0x45   : > { %s2949_s15 = scalar_lea.vmem (!%p2854_p3), [#allocation3], %s3293_s26 }
  0x48   : > { %2680 = dma.done.wait (%p2905_p12), %s488_s17, 128  }
  0x49   : > { %2682 = vsyncadd (%p2905_p12), %s488_s17, 4294967168 }
  0x4a   : > { %2684 = dma.done.wait (%p57_p1), [#allocation7], 1024  }
  0x4b   : > { %2686 = vsyncadd (%p57_p1), [#allocation7], 4294966272 }
  0x4c   : > { %2688 = dma.done.wait (%p57_p1), [#allocation10], 1536  }
  0x4d   : > { %2690 = vsyncadd (%p57_p1), [#allocation10], 4294965760  ;;  %vm565_vm0 = vcmask 261120   ;;  %v562_v0 = vld [vmem:[%s2949_s15] sm:$0xff]  ;;  %v2723_v2 = vmov 32.0   ;;  %v604_v16 = vld [vmem:[#allocation6 + $0x8] sm:$0xff] }
  0x4e   : > { %v566_v1 = vsel %vm565_vm0, %v562_v0, 0.0  ;;  %2414 = vrcp.f32 %v2723_v2  ;;  %v606_v14 = vld [vmem:[#allocation6 + $0x18] sm:$0xff]  ;;  %v605_v15 = vld [vmem:[#allocation6 + $0x10] sm:$0xff]  ;;  %v603_v17 = vld [vmem:[#allocation6] sm:$0xff]  ;;  %s3318_s1 = sld [smem:[#allocation24_spill]]  ;;  %vm634_vm5 = vcmask 785408  }
  0x4f   : > { %567 = vadd.xlane.f32.xlu0 %v566_v1  ;;  %626 = vmatpush.msra.mxu0 %v606_v14  ;;  %v2407_v30 = vld [vmem:[%s3276_s2] ss:$0 sm:$0xff]  ;;  %vm637_vm6 = vcmask 31744   ;;  %s2724_s24 = smov 124   ;;  %s2725_s22 = smov 96   ;;  %v2726_v38 = vmov 4.0  }
  0x50   : > { %v2408_v33 = vld [vmem:[%s3278_s4] ss:$0 sm:$0xff]  ;;  %s2727_s19 = smov 92   ;;  %vm711_vm8 = vcmask 64512   ;;  %s2728_s23 = smov 84   ;;  %vm893_vm13 = vcmask 1043456  }
  0x51   : > { %627 = vmatpush.msra.mxu0 %v605_v15  ;;  %s2729_s3 = smov 80   ;;  %s2730_s25 = smov 76  }
  0x52   : > { %s2731_s17 = smov 72   ;;  %s2732_s9 = smov 120  }
  0x53   : > { %628 = vmatpush.msra.mxu0 %v604_v16  ;;  %s2733_s11 = smov 116   ;;  %s2734_s21 = smov 112  }
  0x54   : > { %v2415_v3 = vpop.eup %2414  ;;  %v2406_v27 = vld [vmem:[%s3318_s1] ss:$0 sm:$0xff]  ;;  %s2735_s28 = smov 108   ;;  %s2736_s18 = smov 104  }
  0x55   : > { %v570_v4 = vmul.f32 32.0, %v2415_v3  ;;  %vm574_vm1 = vweird.f32 %v2415_v3  ;;  %629 = vmatpush.msra.mxu0 %v603_v17  ;;  %s2737_s12 = smov 68   ;;  %s2741_s26 = smov 60  }
  0x57   : > { %v571_v5 = vsub.f32 1.0, %v570_v4 }
  0x59   : > { %v572_v6 = vmul.f32 %v2415_v3, %v571_v5 }
  0x5b   : > { %v573_v7 = vadd.f32 %v2415_v3, %v572_v6 }
  0x5d   : > { %v2965_v8 = vsel %vm574_vm1, %v2415_v3, %v573_v7 }
  0xc2   : > { %v568_v9 = vpop.xlane.xlu0 %567 }
  0xc3   : > { %v576_v10 = vmul.f32 %v2965_v8, %v568_v9 }
  0xc5   : > { %v577_v11 = vsub.f32 %v562_v0, %v576_v10 }
  0xc7   : > { %v578_v12 = vmul.f32 %v577_v11, %v577_v11 }
  0xc9   : > { %v579_v13 = vsel %vm565_vm0, %v578_v12, 0.0 }
  0xca   : > { %580 = vadd.xlane.f32.xlu0 %v579_v13 }
 0x13d   : > { %v581_v18 = vpop.xlane.xlu0 %580 }
 0x13e   : > { %v582_v19 = vmul.f32 %v581_v18, %v2965_v8 }
 0x140   : > { %v583_v20 = vadd.f32 1e-05, %v582_v19 }
 0x142   : > { %2416 = vrsqrt.f32 %v583_v20  ;;  %vm590_vm3 = vweird.f32 %v583_v20 }
 0x143   : > { %2418 = vrcp.f32 %v2726_v38 }
 0x148   : > { %v2417_v21 = vpop.eup %2416 }
 0x149   : > { %v585_v22 = vmul.f32 %v2417_v21, %v583_v20  ;;  %vm591_vm2 = vweird.f32 %v2417_v21  ;;  %v2419_v39 = vpop.eup %2418 }
 0x14a   : > { %vm592_vm4 = vmor %vm590_vm3, %vm591_vm2  ;;  %v642_v40 = vmul.f32 4.0, %v2419_v39  ;;  %vm646_vm7 = vweird.f32 %v2419_v39 }
 0x14b   : > { %v586_v23 = vmul.f32 %v2417_v21, %v585_v22 }
 0x14c   : > { %v643_v41 = vsub.f32 1.0, %v642_v40 }
 0x14d   : > { %v587_v24 = vmul.f32 0.5, %v586_v23 }
 0x14e   : > { %v644_v42 = vmul.f32 %v2419_v39, %v643_v41 }
 0x14f   : > { %v588_v25 = vsub.f32 1.5, %v587_v24 }
 0x150   : > { %v645_v43 = vadd.f32 %v2419_v39, %v644_v42 }
 0x151   : > { %v589_v26 = vmul.f32 %v2417_v21, %v588_v25 }
 0x152   : > { %v2987_v45 = vsel %vm646_vm7, %v2419_v39, %v645_v43 }
 0x153   : > { %v593_v28 = vsel %vm592_vm4, %v2417_v21, %v589_v26 }
 0x154   : > { %v594_v29 = vmul.f32 %v593_v28, %v577_v11 }
 0x156   : > { %v598_v31 = vmul.f32 %v2406_v27, %v594_v29 }
 0x158   : > { %v602_v32 = vadd.f32 %v2407_v30, %v598_v31 }
 0x15a   : > { %2208 = vmatmul.msk.f32.vlgmr.msra.gmra.mxu0 %vm565_vm0, %v602_v32 }
 0x1d7   : > { %v631_v34 = vpop.f32.mrf.mxu0 }
 0x1d8   : > { %v632_v35 = vadd.f32 %v2408_v33, %v631_v34 }
 0x1da   : > { %635 = vst.msk [vmem:[#allocation2] sm:$0xff] %vm634_vm5, %v632_v35 }
 0x1e1   : > { %v2980_v36 = vld [vmem:[#allocation2] sm:$0xff] }
 0x1e2   : > { %766 = vrot.lane.b32.xlu0 %v2980_v36, %s2724_s24  ;;  %675 = vrot.lane.b32.xlu1 %v2980_v36, %s2725_s22  ;;  %v638_v37 = vsel %vm637_vm6, %v2980_v36, 0.0 }
 0x1e3   : > { %639 = vadd.xlane.f32.xlu2 %v638_v37 }
 0x254   : > { %v676_v44 = vpop.permute.xlu1 %675  ;;  %v767_v53 = vpop.permute.xlu0 %766 }
 0x255   : > { %v678_v46 = vsel %vm637_vm6, %v676_v44, 0.0  ;;  %v769_v54 = vsel %vm637_vm6, %v767_v53, 0.0 }
 0x256   : > { %679 = vadd.xlane.f32.xlu1 %v678_v46  ;;  %v640_v47 = vpop.xlane.xlu2 %639 }
 0x257   : > { %v648_v48 = vmul.f32 %v2987_v45, %v640_v47 }
 0x259   : > { %v649_v49 = vsub.f32 %v2980_v36, %v648_v48 }
 0x25b   : > { %2209 = vmatpush.xpose.msk.msra.mxu1 %vm637_vm6, %v649_v49 }
 0x25e   : > { %2210 = vmatmul.msk.f32.vlgmr.msra.gmra.mxu1 %vm637_vm6, %v649_v49 }
 0x2c9   : > { %v680_v50 = vpop.xlane.xlu1 %679 }
 0x2ca   : > { %v681_v51 = vmul.f32 %v680_v50, %v2987_v45 }
 0x2cc   : > { %v682_v52 = vsub.f32 %v2980_v36, %v681_v51 }
 0x2ce   : > { %684 = vrot.lane.b32.xlu2 %v682_v52, %s2725_s22  ;;  %s2739_s22 = smov 64  }
 0x2d6   : > { %800 = vrot.lane.b32.xlu2 %v2980_v36, %s2727_s19 }
 0x2db   : > { %v670_v60 = vpop.f32.mrf.mxu1 }
 0x2dc   : > { %v673_v63 = vmul.f32 0.33333334, %v670_v60 }
 0x2ff   : > { %770 = vadd.xlane.f32.xlu2 %v769_v54 }
 0x328   : > { %v685_v55 = vpop.permute.xlu2 %684 }
 0x329   : > { %2211 = vmatpush.xpose.msk.msrb.mxu0 %vm637_vm6, %v685_v55 }
 0x32c   : > { %2212 = vmatmul.msk.f32.vlgmr.msrb.gmra.mxu0 %vm637_vm6, %v685_v55 }
 0x330   : > { %v801_v56 = vpop.permute.xlu2 %800 }
 0x331   : > { %v803_v57 = vsel %vm637_vm6, %v801_v56, 0.0 }
 0x332   : > { %804 = vadd.xlane.f32.xlu1 %v803_v57 }
 0x372   : > { %v771_v4 = vpop.xlane.xlu2 %770 }
 0x373   : > { %v772_v5 = vmul.f32 %v771_v4, %v2987_v45 }
 0x375   : > { %v773_v6 = vsub.f32 %v2980_v36, %v772_v5 }
 0x3a5   : > { %v805_v58 = vpop.xlane.xlu1 %804 }
 0x3a6   : > { %v806_v59 = vmul.f32 %v805_v58, %v2987_v45 }
 0x3a8   : > { %v807_v61 = vsub.f32 %v2980_v36, %v806_v59 }
 0x3a9   : > { %v705_v62 = vpop.f32.mrf.mxu0 }
 0x3aa   : > { %v708_v0 = vmul.f32 0.33333334, %v705_v62  ;;  %809 = vrot.lane.b32.xlu2 %v807_v61, %s2727_s19  ;;  %s2740_s19 = smov 88   ;;  %v763_v61 = vld [vmem:[#allocation8] sm:$0xf] }
 0x3ac   : > { %v709_v1 = vsub.f32 %v673_v63, %v708_v0 }
 0x3ae   : > { %v710_v2 = vand.u32 2147483647, %v709_v1 }
 0x3b0   : > { %v712_v3 = vsel %vm711_vm8, %v710_v2, -inf }
 0x3b1   : > { %713 = vmax.xlane.f32.xlu0 %v712_v3 }
 0x3b2   : > { %1132 = vrot.lane.b32.xlu2 %v2980_v36, %s2728_s23 }
 0x3ba   : > { %1285 = vrot.lane.b32.xlu2 %v2980_v36, %s2729_s3 }
 0x3c2   : > { %1438 = vrot.lane.b32.xlu2 %v2980_v36, %s2730_s25 }
 0x3c5   : > { %775 = vrot.lane.b32.xlu0 %v773_v6, %s2724_s24  ;;  %s3294_s24 = smov 100  }
 0x3ca   : > { %1591 = vrot.lane.b32.xlu2 %v2980_v36, %s2731_s17 }
 0x3cd   : > { %945 = vrot.lane.b32.xlu0 %v2980_v36, %s2732_s9 }
 0x3d5   : > { %1098 = vrot.lane.b32.xlu0 %v2980_v36, %s2733_s11 }
 0x3dd   : > { %1251 = vrot.lane.b32.xlu0 %v2980_v36, %s2734_s21 }
 0x3e5   : > { %1404 = vrot.lane.b32.xlu0 %v2980_v36, %s2735_s28 }
 0x3ed   : > { %1557 = vrot.lane.b32.xlu0 %v2980_v36, %s2736_s18 }
 0x3f5   : > { %1744 = vrot.lane.b32.xlu0 %v2980_v36, %s2737_s12 }
 0x3fd   : > { %1710 = vrot.lane.b32.xlu0 %v2980_v36, %s3294_s24 }
 0x404   : > { %v810_v7 = vpop.permute.xlu2 %809 }
 0x405   : > { %2216 = vmatpush.xpose.msk.msrb.mxu1 %vm637_vm6, %v810_v7 }
 0x408   : > { %2217 = vmatmul.msk.f32.vlgmr.msrb.gmra.mxu1 %vm637_vm6, %v810_v7 }
 0x40c   : > { %v1133_v26 = vpop.permute.xlu2 %1132 }
 0x40d   : > { %v1135_v27 = vsel %vm637_vm6, %v1133_v26, 0.0 }
 0x414   : > { %v1286_v28 = vpop.permute.xlu2 %1285 }
 0x415   : > { %v1288_v29 = vsel %vm637_vm6, %v1286_v28, 0.0 }
 0x41c   : > { %v1439_v49 = vpop.permute.xlu2 %1438 }
 0x41d   : > { %v1441_v50 = vsel %vm637_vm6, %v1439_v49, 0.0 }
 0x424   : > { %v714_v9 = vpop.xlane.xlu0 %713  ;;  %v1592_v51 = vpop.permute.xlu2 %1591 }
 0x425   : > { %v715_v10 = vsub.f32 %v710_v2, %v714_v9  ;;  %v1594_v52 = vsel %vm637_vm6, %v1592_v51, 0.0 }
 0x427   : > { %v716_v11 = vmul.f32 1.442695, %v715_v10 }
 0x429   : > { %2420 = vpow2.f32 %v716_v11 }
 0x42f   : > { %v2421_v12 = vpop.eup %2420 }
 0x430   : > { %v718_v13 = vsel %vm711_vm8, %v2421_v12, 0.0 }
 0x431   : > { %719 = vadd.xlane.f32.xlu1 %v718_v13 }
 0x437   : > { %v776_v14 = vpop.permute.xlu0 %775 }
 0x43f   : > { %v946_v15 = vpop.permute.xlu0 %945 }
 0x440   : > { %v948_v25 = vsel %vm637_vm6, %v946_v15, 0.0 }
 0x447   : > { %v1099_v16 = vpop.permute.xlu0 %1098 }
 0x448   : > { %v1101_v17 = vsel %vm637_vm6, %v1099_v16, 0.0 }
 0x449   : > { %1102 = vadd.xlane.f32.xlu0 %v1101_v17 }
 0x44a   : > { %737 = vrot.lane.b32.xlu1 %v2980_v36, %s2739_s22  ;;  %s2207_s22 = sshll.u32 %s2943_s13, 6 }
 0x44b   : > { %s3045_s24 = scalar_lea.vmem [#allocation13], %s2207_s22 }
 0x44f   : > { %v1252_v18 = vpop.permute.xlu0 %1251 }
 0x450   : > { %v1254_v30 = vsel %vm637_vm6, %v1252_v18, 0.0 }
 0x452   : > { %979 = vrot.lane.b32.xlu1 %v2980_v36, %s2740_s19 }
 0x457   : > { %v1405_v19 = vpop.permute.xlu0 %1404 }
 0x458   : > { %v1407_v31 = vsel %vm637_vm6, %v1405_v19, 0.0 }
 0x45f   : > { %v1558_v20 = vpop.permute.xlu0 %1557 }
 0x460   : > { %v1560_v53 = vsel %vm637_vm6, %v1558_v20, 0.0 }
 0x467   : > { %v1745_v21 = vpop.permute.xlu0 %1744 }
 0x468   : > { %v1747_v22 = vsel %vm637_vm6, %v1745_v21, 0.0 }
 0x469   : > { %1748 = vadd.xlane.f32.xlu0 %v1747_v22 }
 0x46f   : > { %v1711_v23 = vpop.permute.xlu0 %1710 }
 0x470   : > { %v1713_v24 = vsel %vm637_vm6, %v1711_v23, 0.0 }
 0x471   : > { %1714 = vadd.xlane.f32.xlu0 %v1713_v24 }
 0x47c   : > { %949 = vadd.xlane.f32.xlu1 %v948_v25 }
 0x484   : > { %1136 = vadd.xlane.f32.xlu1 %v1135_v27 }
 0x485   : > { %v830_v10 = vpop.f32.mrf.mxu1 }
 0x48c   : > { %1289 = vadd.xlane.f32.xlu1 %v1288_v29 }
 0x494   : > { %1255 = vadd.xlane.f32.xlu1 %v1254_v30 }
 0x49c   : > { %1408 = vadd.xlane.f32.xlu1 %v1407_v31 }
 0x4a4   : > { %v720_v32 = vpop.xlane.xlu1 %719 }
 0x4a5   : > { %2422 = vrcp.f32 %v720_v32  ;;  %v732_v37 = vand.u32 2147483648, %v720_v32  ;;  %v730_v39 = vand.u32 2147483647, %v720_v32  ;;  %vm726_vm10 = vweird.f32 %v720_v32 }
 0x4a7   : > { %v733_v41 = vor.u32 1.1754944e-38, %v732_v37  ;;  %vm731_vm12 = vcmp.eq.f32.partialorder %v730_v39, 8.507059e+37 }
 0x4ab   : > { %v2423_v33 = vpop.eup %2422 }
 0x4ac   : > { %v722_v34 = vmul.f32 %v2423_v33, %v720_v32  ;;  %vm727_vm9 = vweird.f32 %v2423_v33 }
 0x4ad   : > { %vm728_vm11 = vmor %vm726_vm10, %vm727_vm9 }
 0x4ae   : > { %v723_v35 = vsub.f32 1.0, %v722_v34 }
 0x4b0   : > { %v724_v38 = vmul.f32 %v2423_v33, %v723_v35 }
 0x4b2   : > { %v725_v40 = vadd.f32 %v2423_v33, %v724_v38 }
 0x4b4   : > { %v729_v42 = vsel %vm728_vm11, %v2423_v33, %v725_v40 }
 0x4b5   : > { %862 = vrot.lane.b32.xlu1 %v2980_v36, %s2741_s26  ;;  %v734_v43 = vsel %vm731_vm12, %v733_v41, %v729_v42  ;;  %s3319_s26 = smov 100  }
 0x4b6   : > { %v735_v44 = vmul.f32 %v2421_v12, %v734_v43 }
 0x4b8   : > { %736 = vst.msk [vmem:[%s3045_s24] sm:$0xff] %vm711_vm8, %v735_v44 }
 0x4bc   : > { %v738_v46 = vpop.permute.xlu1 %737  ;;  %v1103_v9 = vpop.xlane.xlu0 %1102 }
 0x4bd   : > { %758 = vmatpush.msra.mxu3 %v738_v46  ;;  %v1104_v37 = vmul.f32 %v1103_v9, %v2987_v45 }
 0x4be   : > { %2213 = vmatmul.msk.f32.vlgmr.msra.gmra.mxu3 %vm711_vm8, %v735_v44 }
 0x4bf   : > { %2214 = vmatpush.xpose.msk.msrb.mxu3 %vm637_vm6, %v776_v14  ;;  %v1105_v38 = vsub.f32 %v2980_v36, %v1104_v37 }
 0x4c3   : > { %2222 = vmatpush.msk.msra.mxu3 %vm893_vm13, %v763_v61 }
 0x4c4   : > { %v980_v47 = vpop.permute.xlu1 %979 }
 0x4c5   : > { %v982_v48 = vsel %vm637_vm6, %v980_v47, 0.0 }
 0x4c6   : > { %983 = vadd.xlane.f32.xlu2 %v982_v48  ;;  %2215 = vmatmul.msk.f32.vlgmr.msrb.gmra.mxu3 %vm637_vm6, %v776_v14  ;;  %v833_v14 = vmul.f32 0.33333334, %v830_v10 }
 0x4ce   : > { %1442 = vadd.xlane.f32.xlu2 %v1441_v50 }
 0x4d6   : > { %1595 = vadd.xlane.f32.xlu2 %v1594_v52 }
 0x4dc   : > { %v1749_v18 = vpop.xlane.xlu0 %1748 }
 0x4dd   : > { %v1750_v20 = vmul.f32 %v1749_v18, %v2987_v45 }
 0x4de   : > { %1561 = vadd.xlane.f32.xlu2 %v1560_v53 }
 0x4df   : > { %v1751_v24 = vsub.f32 %v2980_v36, %v1750_v20 }
 0x4e4   : > { %v1715_v26 = vpop.xlane.xlu0 %1714 }
 0x4e5   : > { %v1716_v43 = vmul.f32 %v1715_v26, %v2987_v45 }
 0x4e7   : > { %v1717_v44 = vsub.f32 %v2980_v36, %v1716_v43 }
 0x4ef   : > { %v950_v54 = vpop.xlane.xlu1 %949 }
 0x4f0   : > { %v951_v55 = vmul.f32 %v950_v54, %v2987_v45 }
 0x4f2   : > { %v952_v56 = vsub.f32 %v2980_v36, %v951_v55 }
 0x4f4   : > { %954 = vrot.lane.b32.xlu0 %v952_v56, %s2732_s9  ;;  %s2746_s9 = smov 40  }
 0x4f7   : > { %v1137_v57 = vpop.xlane.xlu1 %1136 }
 0x4f8   : > { %v1138_v27 = vmul.f32 %v1137_v57, %v2987_v45 }
 0x4fa   : > { %v1139_v29 = vsub.f32 %v2980_v36, %v1138_v27 }
 0x4ff   : > { %v1290_v58 = vpop.xlane.xlu1 %1289 }
 0x500   : > { %v1291_v2 = vmul.f32 %v1290_v58, %v2987_v45 }
 0x502   : > { %v1292_v6 = vsub.f32 %v2980_v36, %v1291_v2 }
 0x507   : > { %v1256_v59 = vpop.xlane.xlu1 %1255 }
 0x508   : > { %v1257_v39 = vmul.f32 %v1256_v59, %v2987_v45 }
 0x50a   : > { %v1258_v40 = vsub.f32 %v2980_v36, %v1257_v39 }
 0x50f   : > { %v1409_v60 = vpop.xlane.xlu1 %1408 }
 0x510   : > { %v1410_v11 = vmul.f32 %v1409_v60, %v2987_v45 }
 0x512   : > { %v1411_v16 = vsub.f32 %v2980_v36, %v1410_v11 }
 0x527   : > { %v863_v62 = vpop.permute.xlu1 %862 }
 0x528   : > { %883 = vmatpush.msra.mxu2 %v863_v62 }
 0x539   : > { %v984_v63 = vpop.xlane.xlu2 %983 }
 0x53a   : > { %v985_v0 = vmul.f32 %v984_v63, %v2987_v45 }
 0x53c   : > { %v986_v1 = vsub.f32 %v2980_v36, %v985_v0 }
 0x53e   : > { %988 = vrot.lane.b32.xlu2 %v986_v1, %s2740_s19  ;;  %s2627_s19 = scalar_lea.hbm %s3288_s14, 128 }
 0x541   : > { %v760_v3 = vpop.f32.mrf.mxu3  ;;  %v1443_v4 = vpop.xlane.xlu2 %1442 }
 0x542   : > { %v1444_v5 = vmul.f32 %v1443_v4, %v2987_v45  ;;  %2223 = vmatmul.msk.f32.vlgmr.msra.gmra.mxu3 %vm637_vm6, %v760_v3  ;;  %v889_v3 = vld [vmem:[#allocation8 + $0x4] sm:$0xf] }
 0x543   : > { %2220 = vmatpush.msk.msra.mxu0 %vm893_vm13, %v889_v3 }
 0x544   : > { %v1445_v7 = vsub.f32 %v2980_v36, %v1444_v5 }
 0x546   : > { %1294 = vrot.lane.b32.xlu2 %v1292_v6, %s2729_s3  ;;  %1447 = vrot.lane.b32.xlu0 %v1445_v7, %s2730_s25  ;;  %s2743_s3 = smov 52   ;;  %s2744_s25 = smov 56  }
 0x549   : > { %v796_v12 = vpop.f32.mrf.mxu3  ;;  %v1596_v13 = vpop.xlane.xlu2 %1595 }
 0x54a   : > { %v799_v15 = vmul.f32 0.33333334, %v796_v12  ;;  %v1597_v41 = vmul.f32 %v1596_v13, %v2987_v45 }
 0x54c   : > { %v834_v17 = vsub.f32 %v799_v15, %v833_v14  ;;  %v1598_v42 = vsub.f32 %v2980_v36, %v1597_v41 }
 0x54e   : > { %1413 = vrot.lane.b32.xlu2 %v1411_v16, %s2735_s28  ;;  %v835_v19 = vand.u32 2147483647, %v834_v17 }
 0x550   : > { %v836_v21 = vsel %vm711_vm8, %v835_v19, -inf }
 0x551   : > { %837 = vmax.xlane.f32.xlu1 %v836_v21  ;;  %v1562_v22 = vpop.xlane.xlu2 %1561 }
 0x552   : > { %v1563_v23 = vmul.f32 %v1562_v22, %v2987_v45 }
 0x554   : > { %v1564_v25 = vsub.f32 %v2980_v36, %v1563_v23 }
 0x556   : > { %1753 = vrot.lane.b32.xlu2 %v1751_v24, %s2737_s12  ;;  %1566 = vrot.lane.b32.xlu0 %v1564_v25, %s2736_s18 }
 0x566   : > { %v955_v28 = vpop.permute.xlu0 %954 }
 0x567   : > { %2224 = vmatpush.xpose.msk.msra.mxu1 %vm637_vm6, %v955_v28 }
 0x56a   : > { %2225 = vmatmul.msk.f32.vlgmr.msra.gmra.mxu1 %vm637_vm6, %v955_v28  ;;  %1141 = vrot.lane.b32.xlu1 %v1139_v29, %s2728_s23  ;;  %s2742_s23 = smov 48  }
 0x598   : > { %v989_v30 = vpop.permute.xlu2 %988 }
 0x599   : > { %2226 = vmatpush.xpose.msk.msrb.mxu2 %vm637_vm6, %v989_v30 }
 0x5a0   : > { %v1295_v58 = vpop.permute.xlu2 %1294 }
 0x5a8   : > { %v1414_v62 = vpop.permute.xlu2 %1413 }
 0x5b0   : > { %v1754_v2 = vpop.permute.xlu2 %1753 }
 0x5b8   : > { %v1448_v60 = vpop.permute.xlu0 %1447 }
 0x5c4   : > { %v838_v31 = vpop.xlane.xlu1 %837 }
 0x5c5   : > { %v839_v32 = vsub.f32 %v835_v19, %v838_v31 }
 0x5c7   : > { %v840_v33 = vmul.f32 1.442695, %v839_v32 }
 0x5c8   : > { %v1567_v63 = vpop.permute.xlu0 %1566 }
 0x5c9   : > { %2424 = vpow2.f32 %v840_v33 }
 0x5cf   : > { %v2425_v34 = vpop.eup %2424 }
 0x5d0   : > { %v842_v35 = vsel %vm711_vm8, %v2425_v34, 0.0 }
 0x5d1   : > { %843 = vadd.xlane.f32.xlu1 %v842_v35 }
 0x5dc   : > { %v1142_v46 = vpop.permute.xlu1 %1141 }
 0x5e7   : > { %v975_v4 = vpop.f32.mrf.mxu1 }
 0x5e8   : > { %v978_v9 = vmul.f32 0.33333334, %v975_v4 }
 0x5ea   : > { %1107 = vrot.lane.b32.xlu1 %v1105_v38, %s2733_s11  ;;  %s2747_s11 = smov 36  }
 0x5f2   : > { %1260 = vrot.lane.b32.xlu1 %v1258_v40, %s2734_s21  ;;  %s2018_s21 = scalar_lea.sflag [#allocation14], %s2943_s13 }
 0x5fa   : > { %1600 = vrot.lane.b32.xlu1 %v1598_v42, %s2731_s17  ;;  %s2745_s17 = smov 44  }
 0x602   : > { %1719 = vrot.lane.b32.xlu1 %v1717_v44, %s3319_s26 }
 0x644   : > { %v844_v47 = vpop.xlane.xlu1 %843 }
 0x645   : > { %2426 = vrcp.f32 %v844_v47  ;;  %v856_v51 = vand.u32 2147483648, %v844_v47  ;;  %v854_v53 = vand.u32 2147483647, %v844_v47  ;;  %vm850_vm15 = vweird.f32 %v844_v47 }
 0x647   : > { %v857_v55 = vor.u32 1.1754944e-38, %v856_v51  ;;  %vm855_vm2 = vcmp.eq.f32.partialorder %v854_v53, 8.507059e+37 }
 0x64b   : > { %v2427_v48 = vpop.eup %2426 }
 0x64c   : > { %v846_v49 = vmul.f32 %v2427_v48, %v844_v47  ;;  %vm851_vm14 = vweird.f32 %v2427_v48 }
 0x64d   : > { %vm852_vm1 = vmor %vm850_vm15, %vm851_vm14 }
 0x64e   : > { %v847_v50 = vsub.f32 1.0, %v846_v49 }
 0x650   : > { %v848_v52 = vmul.f32 %v2427_v48, %v847_v50 }
 0x652   : > { %v849_v54 = vadd.f32 %v2427_v48, %v848_v52 }
 0x654   : > { %v853_v45 = vsel %vm852_vm1, %v2427_v48, %v849_v54 }
 0x655   : > { %v858_v56 = vsel %vm855_vm2, %v857_v55, %v853_v45 }
 0x656   : > { %v859_v57 = vmul.f32 %v2425_v34, %v858_v56 }
 0x658   : > { %2218 = vst.msk [vmem:[%s3045_s24 + $0x8] sm:$0xff] %vm711_vm8, %v859_v57  ;;  %2219 = vmatmul.msk.f32.vlgmr.msra.gmra.mxu2 %vm711_vm8, %v859_v57 }
 0x659   : > { %2234 = vmatpush.xpose.msk.msra.mxu2 %vm637_vm6, %v1142_v46 }
 0x65c   : > { %v1108_v59 = vpop.permute.xlu1 %1107 }
 0x65d   : > { %2232 = vmatpush.xpose.msk.msrb.mxu1 %vm637_vm6, %v1108_v59 }
 0x660   : > { %2227 = vmatmul.msk.f32.vlgmr.msrb.gmra.mxu2 %vm637_vm6, %v989_v30  ;;  %2233 = vmatmul.msk.f32.vlgmr.msrb.gmra.mxu1 %vm637_vm6, %v1108_v59 }
 0x661   : > { %2242 = vmatpush.xpose.msk.msrb.mxu2 %vm637_vm6, %v1295_v58 }
 0x664   : > { %v1261_v61 = vpop.permute.xlu1 %1260 }
 0x665   : > { %2240 = vmatpush.xpose.msk.msra.mxu1 %vm637_vm6, %v1261_v61 }
 0x668   : > { %2235 = vmatmul.msk.f32.vlgmr.msra.gmra.mxu2 %vm637_vm6, %v1142_v46  ;;  %2241 = vmatmul.msk.f32.vlgmr.msra.gmra.mxu1 %vm637_vm6, %v1261_v61 }
 0x669   : > { %2248 = vmatpush.xpose.msk.msrb.mxu1 %vm637_vm6, %v1414_v62  ;;  %2250 = vmatpush.xpose.msk.msra.mxu2 %vm637_vm6, %v1448_v60 }
 0x66c   : > { %v1601_v0 = vpop.permute.xlu1 %1600 }
 0x66d   : > { %2256 = vmatpush.xpose.msk.msra.mxu1 %vm637_vm6, %v1567_v63 }
 0x670   : > { %2243 = vmatmul.msk.f32.vlgmr.msrb.gmra.mxu2 %vm637_vm6, %v1295_v58  ;;  %2249 = vmatmul.msk.f32.vlgmr.msrb.gmra.mxu1 %vm637_vm6, %v1414_v62 }
 0x671   : > { %2258 = vmatpush.xpose.msk.msrb.mxu2 %vm637_vm6, %v1601_v0 }
 0x674   : > { %v1720_v1 = vpop.permute.xlu1 %1719 }
 0x675   : > { %2264 = vmatpush.xpose.msk.msrb.mxu1 %vm637_vm6, %v1720_v1 }
 0x678   : > { %2251 = vmatmul.msk.f32.vlgmr.msra.gmra.mxu2 %vm637_vm6, %v1448_v60  ;;  %2257 = vmatmul.msk.f32.vlgmr.msra.gmra.mxu1 %vm637_vm6, %v1567_v63 }
 0x679   : > { %2266 = vmatpush.xpose.msk.msra.mxu2 %vm637_vm6, %v1754_v2 }
 0x680   : > { %2259 = vmatmul.msk.f32.vlgmr.msrb.gmra.mxu2 %vm637_vm6, %v1601_v0  ;;  %2265 = vmatmul.msk.f32.vlgmr.msrb.gmra.mxu1 %vm637_vm6, %v1720_v1 }
 0x688   : > { %2267 = vmatmul.msk.f32.vlgmr.msra.gmra.mxu2 %vm637_vm6, %v1754_v2 }
 0x6db   : > { %v885_v5 = vpop.f32.mrf.mxu2 }
 0x6dc   : > { %2221 = vmatmul.msk.f32.vlgmr.msra.gmra.mxu0 %vm637_vm6, %v885_v5 }
 0x6dd   : > { %v1128_v6 = vpop.f32.mrf.mxu1 }
 0x6de   : > { %v1131_v16 = vmul.f32 0.33333334, %v1128_v6 }
 0x6e3   : > { %v1009_v7 = vpop.f32.mrf.mxu2 }
 0x6e4   : > { %v1012_v10 = vmul.f32 0.33333334, %v1009_v7 }
 0x6e5   : > { %v1281_v14 = vpop.f32.mrf.mxu1 }
 0x6e6   : > { %v1013_v11 = vsub.f32 %v978_v9, %v1012_v10  ;;  %v1284_v22 = vmul.f32 0.33333334, %v1281_v14 }
 0x6e8   : > { %v1014_v12 = vand.u32 2147483647, %v1013_v11 }
 0x6ea   : > { %v1015_v13 = vsel %vm711_vm8, %v1014_v12, -inf }
 0x6eb   : > { %v1162_v15 = vpop.f32.mrf.mxu2  ;;  %1016 = vmax.xlane.f32.xlu0 %v1015_v13 }
 0x6ec   : > { %v1165_v17 = vmul.f32 0.33333334, %v1162_v15 }
 0x6ed   : > { %v1434_v24 = vpop.f32.mrf.mxu1 }
 0x6ee   : > { %v1166_v18 = vsub.f32 %v1131_v16, %v1165_v17  ;;  %v1437_v29 = vmul.f32 0.33333334, %v1434_v24 }
 0x6f0   : > { %v1167_v19 = vand.u32 2147483647, %v1166_v18 }
 0x6f2   : > { %v1168_v20 = vsel %vm711_vm8, %v1167_v19, -inf }
 0x6f3   : > { %1169 = vmax.xlane.f32.xlu2 %v1168_v20  ;;  %v1315_v21 = vpop.f32.mrf.mxu2 }
 0x6f4   : > { %v1318_v23 = vmul.f32 0.33333334, %v1315_v21 }
 0x6f5   : > { %v1587_v32 = vpop.f32.mrf.mxu1 }
 0x6f6   : > { %v1319_v25 = vsub.f32 %v1284_v22, %v1318_v23  ;;  %v1590_v37 = vmul.f32 0.33333334, %v1587_v32 }
 0x6f8   : > { %v1320_v26 = vand.u32 2147483647, %v1319_v25 }
 0x6fa   : > { %v1321_v27 = vsel %vm711_vm8, %v1320_v26, -inf }
 0x6fb   : > { %v1468_v28 = vpop.f32.mrf.mxu2  ;;  %1322 = vmax.xlane.f32.xlu1 %v1321_v27 }
 0x6fc   : > { %v1471_v30 = vmul.f32 0.33333334, %v1468_v28 }
 0x6fd   : > { %v1740_v41 = vpop.f32.mrf.mxu1 }
 0x6fe   : > { %v1472_v31 = vsub.f32 %v1437_v29, %v1471_v30  ;;  %v1743_v44 = vmul.f32 0.33333334, %v1740_v41 }
 0x700   : > { %v1473_v33 = vand.u32 2147483647, %v1472_v31 }
 0x702   : > { %v1474_v34 = vsel %vm711_vm8, %v1473_v33, -inf }
 0x703   : > { %v1621_v35 = vpop.f32.mrf.mxu2  ;;  %1475 = vmax.xlane.f32.xlu0 %v1474_v34 }
 0x704   : > { %v1624_v38 = vmul.f32 0.33333334, %v1621_v35 }
 0x706   : > { %v1625_v39 = vsub.f32 %v1590_v37, %v1624_v38 }
 0x708   : > { %v1626_v40 = vand.u32 2147483647, %v1625_v39 }
 0x70a   : > { %v1627_v42 = vsel %vm711_vm8, %v1626_v40, -inf }
 0x70b   : > { %1628 = vmax.xlane.f32.xlu2 %v1627_v42  ;;  %v1774_v43 = vpop.f32.mrf.mxu2 }
 0x70c   : > { %v1777_v46 = vmul.f32 0.33333334, %v1774_v43 }
 0x70e   : > { %v1778_v47 = vsub.f32 %v1743_v44, %v1777_v46 }
 0x710   : > { %v1779_v48 = vand.u32 2147483647, %v1778_v47 }
 0x712   : > { %v1780_v49 = vsel %vm711_vm8, %v1779_v48, -inf }
 0x713   : > { %1781 = vmax.xlane.f32.xlu1 %v1780_v49 }
 0x723   : > { %1347 = vrot.lane.b32.xlu2 %v2980_v36, %s2742_s23  ;;  %s2282_s23 = sshll.u32 %s2849_s20, 6 }
 0x72c   : > { %1194 = vrot.lane.b32.xlu1 %v2980_v36, %s2743_s3 }
 0x75e   : > { %v1017_v50 = vpop.xlane.xlu0 %1016 }
 0x75f   : > { %v1018_v51 = vsub.f32 %v1014_v12, %v1017_v50 }
 0x761   : > { %v1019_v52 = vmul.f32 1.442695, %v1018_v51 }
 0x763   : > { %2428 = vpow2.f32 %v1019_v52 }
 0x766   : > { %v1170_v53 = vpop.xlane.xlu2 %1169 }
 0x767   : > { %v1171_v54 = vsub.f32 %v1167_v19, %v1170_v53 }
 0x769   : > { %v3133_v55 = vpop.eup %2428  ;;  %v1172_v45 = vmul.f32 1.442695, %v1171_v54 }
 0x76a   : > { %v1021_v56 = vsel %vm711_vm8, %v3133_v55, 0.0 }
 0x76b   : > { %2430 = vpow2.f32 %v1172_v45  ;;  %1022 = vadd.xlane.f32.xlu0 %v1021_v56 }
 0x76e   : > { %v1323_v57 = vpop.xlane.xlu1 %1322 }
 0x76f   : > { %v1324_v58 = vsub.f32 %v1320_v26, %v1323_v57 }
 0x771   : > { %v3137_v59 = vpop.eup %2430  ;;  %v1325_v60 = vmul.f32 1.442695, %v1324_v58 }
 0x772   : > { %v1174_v61 = vsel %vm711_vm8, %v3137_v59, 0.0 }
 0x773   : > { %2432 = vpow2.f32 %v1325_v60  ;;  %1175 = vadd.xlane.f32.xlu2 %v1174_v61 }
 0x776   : > { %v1476_v62 = vpop.xlane.xlu0 %1475 }
 0x777   : > { %v1477_v63 = vsub.f32 %v1473_v33, %v1476_v62 }
 0x779   : > { %v3141_v0 = vpop.eup %2432  ;;  %v1478_v1 = vmul.f32 1.442695, %v1477_v63 }
 0x77a   : > { %v1327_v2 = vsel %vm711_vm8, %v3141_v0, 0.0 }
 0x77b   : > { %2434 = vpow2.f32 %v1478_v1  ;;  %1328 = vadd.xlane.f32.xlu1 %v1327_v2 }
 0x77e   : > { %v1629_v3 = vpop.xlane.xlu2 %1628 }
 0x77f   : > { %v1630_v4 = vsub.f32 %v1626_v40, %v1629_v3  ;;  %1041 = vrot.lane.b32.xlu0 %v2980_v36, %s2744_s25 }
 0x781   : > { %v3146_v5 = vpop.eup %2434  ;;  %v1631_v6 = vmul.f32 1.442695, %v1630_v4 }
 0x782   : > { %v1480_v7 = vsel %vm711_vm8, %v3146_v5, 0.0 }
 0x783   : > { %2436 = vpow2.f32 %v1631_v6  ;;  %1481 = vadd.xlane.f32.xlu2 %v1480_v7 }
 0x786   : > { %v1782_v11 = vpop.xlane.xlu1 %1781  ;;  %v1348_v16 = vpop.permute.xlu2 %1347 }
 0x787   : > { %v1783_v12 = vsub.f32 %v1779_v48, %v1782_v11 }
 0x789   : > { %v3150_v9 = vpop.eup %2436  ;;  %v1784_v13 = vmul.f32 1.442695, %v1783_v12 }
 0x78a   : > { %v1633_v10 = vsel %vm711_vm8, %v3150_v9, 0.0 }
 0x78b   : > { %1634 = vadd.xlane.f32.xlu2 %v1633_v10  ;;  %2438 = vpow2.f32 %v1784_v13 }
 0x791   : > { %v3157_v14 = vpop.eup %2438 }
 0x792   : > { %v1786_v15 = vsel %vm711_vm8, %v3157_v14, 0.0 }
 0x794   : > { %1500 = vrot.lane.b32.xlu1 %v2980_v36, %s2745_s17  ;;  %s2043_s17 = scalar_lea.hbm %s3288_s14, %s2282_s23 }
 0x79c   : > { %1653 = vrot.lane.b32.xlu1 %v2980_v36, %s2746_s9  ;;  %s2044_s9 = sshll.u32 %s3045_s24, 4  ;;  %s2045_s9 = int_to_ptr.vmem [resolvable:$true] %s2044_s9 }
 0x79e   : > { %v1195_v19 = vpop.permute.xlu1 %1194 }
 0x7a3   : > { %1806 = vrot.lane.b32.xlu2 %v2980_v36, %s2747_s11  ;;  %s2046_s11 = sshll.u32 %s2043_s17, 4  ;;  %s2047_s11 = int_to_ptr.hbm [resolvable:$true] %s2046_s11 }
 0x7a4   : > { %s2621_s28 = sshra.s32 %s2047_s11, 4  ;;  %s2622_s28 = int_to_ptr.hbm [resolvable:$true] %s2621_s28 }
 0x7a5   : > { %p2628_p12 = scmp.lt.s32.totalorder %s2622_s28, %s3288_s14 }
 0x7a9   : > { %1787 = vadd.xlane.f32.xlu0 %v1786_v15 }
 0x7de   : > { %v1023_v17 = vpop.xlane.xlu0 %1022 }
 0x7df   : > { %2440 = vrcp.f32 %v1023_v17  ;;  %v1035_v23 = vand.u32 2147483648, %v1023_v17  ;;  %v1033_v25 = vand.u32 2147483647, %v1023_v17  ;;  %vm1029_vm4 = vweird.f32 %v1023_v17 }
 0x7e1   : > { %v1036_v27 = vor.u32 1.1754944e-38, %v1035_v23  ;;  %vm1034_vm7 = vcmp.eq.f32.partialorder %v1033_v25, 8.507059e+37 }
 0x7e5   : > { %v2441_v18 = vpop.eup %2440 }
 0x7e6   : > { %v1025_v20 = vmul.f32 %v2441_v18, %v1023_v17  ;;  %v1176_v21 = vpop.xlane.xlu2 %1175  ;;  %vm1030_vm3 = vweird.f32 %v2441_v18 }
 0x7e7   : > { %2442 = vrcp.f32 %v1176_v21  ;;  %vm1031_vm5 = vmor %vm1029_vm4, %vm1030_vm3  ;;  %v1188_v34 = vand.u32 2147483648, %v1176_v21  ;;  %v1186_v38 = vand.u32 2147483647, %v1176_v21  ;;  %vm1182_vm10 = vweird.f32 %v1176_v21 }
 0x7e8   : > { %v1026_v22 = vsub.f32 1.0, %v1025_v20 }
 0x7e9   : > { %v1189_v41 = vor.u32 1.1754944e-38, %v1188_v34  ;;  %vm1187_vm12 = vcmp.eq.f32.partialorder %v1186_v38, 8.507059e+37  ;;  %v1374_v34 = vld [vmem:[#allocation8 + $0x10] sm:$0xf] }
 0x7ea   : > { %v1027_v24 = vmul.f32 %v2441_v18, %v1026_v22 }
 0x7ec   : > { %v1028_v36 = vadd.f32 %v2441_v18, %v1027_v24 }
 0x7ed   : > { %v2443_v26 = vpop.eup %2442 }
 0x7ee   : > { %v1032_v28 = vsel %vm1031_vm5, %v2441_v18, %v1028_v36  ;;  %v1178_v29 = vmul.f32 %v2443_v26, %v1176_v21  ;;  %v1329_v30 = vpop.xlane.xlu1 %1328  ;;  %vm1183_vm9 = vweird.f32 %v2443_v26 }
 0x7ef   : > { %v1037_v31 = vsel %vm1034_vm7, %v1036_v27, %v1032_v28  ;;  %2444 = vrcp.f32 %v1329_v30  ;;  %vm1184_vm11 = vmor %vm1182_vm10, %vm1183_vm9  ;;  %v1341_v49 = vand.u32 2147483648, %v1329_v30  ;;  %v1339_v51 = vand.u32 2147483647, %v1329_v30 }
 0x7f0   : > { %v1179_v32 = vsub.f32 1.0, %v1178_v29  ;;  %v1038_v33 = vmul.f32 %v3133_v55, %v1037_v31  ;;  %vm1335_vm15 = vweird.f32 %v1329_v30  ;;  %v1068_v31 = vld [vmem:[#allocation8 + $0x8] sm:$0xf] }
 0x7f1   : > { %v1042_v35 = vpop.permute.xlu0 %1041  ;;  %v1342_v54 = vor.u32 1.1754944e-38, %v1341_v49  ;;  %vm1340_vm2 = vcmp.eq.f32.partialorder %v1339_v51, 8.507059e+37  ;;  %2230 = vmatpush.msk.msrb.mxu3 %vm893_vm13, %v1068_v31 }
 0x7f2   : > { %v1180_v37 = vmul.f32 %v2443_v26, %v1179_v32  ;;  %1062 = vmatpush.msrb.mxu0 %v1042_v35  ;;  %2228 = vst.msk [vmem:[%s3045_s24 + $0x10] sm:$0xff] %vm711_vm8, %v1038_v33  ;;  %v1221_v32 = vld [vmem:[#allocation8 + $0xc] sm:$0xf] }
 0x7f3   : > { %2229 = vmatmul.msk.f32.vlgmr.msrb.gmra.mxu0 %vm711_vm8, %v1038_v33  ;;  %2238 = vmatpush.msk.msra.mxu3 %vm893_vm13, %v1221_v32  ;;  %v914_v33 = vpop.f32.mrf.mxu0  ;;  %v1980_v32 = vld [vmem:[#allocation11 + $0x30] sm:$0xff] }
 0x7f4   : > { %v1181_v39 = vadd.f32 %v2443_v26, %v1180_v37  ;;  %1215 = vmatpush.msra.mxu0 %v1195_v19  ;;  %v1527_v37 = vld [vmem:[#allocation8 + $0x14] sm:$0xf] }
 0x7f5   : > { %v2445_v40 = vpop.eup %2444 }
 0x7f6   : > { %1368 = vmatpush.msrb.mxu0 %v1348_v16  ;;  %v1185_v42 = vsel %vm1184_vm11, %v2443_v26, %v1181_v39  ;;  %v1331_v43 = vmul.f32 %v2445_v40, %v1329_v30  ;;  %v1482_v44 = vpop.xlane.xlu2 %1481  ;;  %vm1336_vm14 = vweird.f32 %v2445_v40 }
 0x7f7   : > { %v1190_v46 = vsel %vm1187_vm12, %v1189_v41, %v1185_v42  ;;  %2446 = vrcp.f32 %v1482_v44  ;;  %vm1337_vm1 = vmor %vm1335_vm15, %vm1336_vm14  ;;  %v1494_v60 = vand.u32 2147483648, %v1482_v44  ;;  %v1492_v62 = vand.u32 2147483647, %v1482_v44 }
 0x7f8   : > { %v1332_v47 = vsub.f32 1.0, %v1331_v43  ;;  %v1191_v48 = vmul.f32 %v3137_v59, %v1190_v46  ;;  %vm1488_vm4 = vweird.f32 %v1482_v44 }
 0x7f9   : > { %v1495_v2 = vor.u32 1.1754944e-38, %v1494_v60  ;;  %vm1493_vm7 = vcmp.eq.f32.partialorder %v1492_v62, 8.507059e+37  ;;  %v2456_v60 = vld [vmem:[%s2949_s15] sm:$0xff]  ;;  %s2623_s15 = scalar_lea.hbm %s2622_s28, 64 }
 0x7fa   : > { %v1333_v50 = vmul.f32 %v2445_v40, %v1332_v47  ;;  %2236 = vst.msk [vmem:[%s3045_s24 + $0x18] sm:$0xff] %vm711_vm8, %v1191_v48  ;;  %p2624_p1 = scmp.ne.s32.totalorder %s2622_s28, %s2623_s15  ;;  %p2629_p7 = scmp.lt.s32.totalorder %s2627_s19, %s2623_s15 }
 0x7fb   : > { %2237 = vmatmul.msk.f32.vlgmr.msra.gmra.mxu0 %vm711_vm8, %v1191_v48 }
 0x7fc   : > { %v1334_v52 = vadd.f32 %v2445_v40, %v1333_v50  ;;  %p2625_p3 = pnand %p2624_p1, %p2912_p4  ;;  %p2630_p8 = por %p2629_p7, %p2628_p12 }
 0x7fd   : > { %v2447_v53 = vpop.eup %2446 }
 0x7fe   : > { %v1338_v55 = vsel %vm1337_vm1, %v2445_v40, %v1334_v52  ;;  %v1484_v45 = vmul.f32 %v2447_v53, %v1482_v44  ;;  %v1635_v56 = vpop.xlane.xlu2 %1634  ;;  %vm1489_vm3 = vweird.f32 %v2447_v53  ;;  %v1833_v40 = vld [vmem:[#allocation8 + $0x1c] sm:$0xf]  ;;  %v940_v44 = vpop.f32.mrf.mxu3  ;;  %p2626_p5 = pneg %p2625_p3 }
 0x7ff   : > { %v1343_v57 = vsel %vm1340_vm2, %v1342_v54, %v1338_v55  ;;  %2448 = vrcp.f32 %v1635_v56  ;;  %vm1490_vm5 = vmor %vm1488_vm4, %vm1489_vm3  ;;  %v1647_v11 = vand.u32 2147483648, %v1635_v56  ;;  %v1645_v13 = vand.u32 2147483647, %v1635_v56 }
 0x800   : > { %v1485_v58 = vsub.f32 1.0, %v1484_v45  ;;  %v1344_v59 = vmul.f32 %v3141_v0, %v1343_v57  ;;  %vm1641_vm10 = vweird.f32 %v1635_v56  ;;  %v941_v50 = vadd.f32 %v940_v44, %v914_v33  ;;  %p2631_p9 = pnand %p2630_p8, %p2626_p5 }
 0x801   : > { %v1648_v16 = vor.u32 1.1754944e-38, %v1647_v11  ;;  %vm1646_vm12 = vcmp.eq.f32.partialorder %v1645_v13, 8.507059e+37 }
 0x802   : > { %v1486_v61 = vmul.f32 %v2447_v53, %v1485_v58  ;;  %2244 = vst.msk [vmem:[%s3045_s24 + $0x20] sm:$0xff] %vm711_vm8, %v1344_v59 }
 0x803   : > { %2245 = vmatmul.msk.f32.vlgmr.msrb.gmra.mxu0 %vm711_vm8, %v1344_v59 }
 0x804   : > { %v1487_v63 = vadd.f32 %v2447_v53, %v1486_v61 }
 0x805   : > { %v2449_v1 = vpop.eup %2448 }
 0x806   : > { %v1491_v3 = vsel %vm1490_vm5, %v2447_v53, %v1487_v63  ;;  %v1637_v4 = vmul.f32 %v2449_v1, %v1635_v56  ;;  %v1501_v6 = vpop.permute.xlu1 %1500  ;;  %vm1642_vm9 = vweird.f32 %v2449_v1  ;;  %v1807_v20 = vpop.permute.xlu2 %1806  ;;  %v2409_v56 = vld [vmem:[%s3280_s6] ss:$0 sm:$0xff] }
 0x807   : > { %v1496_v7 = vsel %vm1493_vm7, %v1495_v2, %v1491_v3  ;;  %1521 = vmatpush.msra.mxu0 %v1501_v6  ;;  %vm1643_vm11 = vmor %vm1641_vm10, %vm1642_vm9  ;;  %v1902_v6 = vld [vmem:[#allocation9 + $0x18] sm:$0xff]  ;;  %vm1986_vm9 = vcmask 523264  }
 0x808   : > { %v1638_v0 = vsub.f32 1.0, %v1637_v4  ;;  %v1497_v10 = vmul.f32 %v3146_v5, %v1496_v7  ;;  %1922 = vmatpush.msra.mxu1 %v1902_v6  ;;  %v1901_v7 = vld [vmem:[#allocation9 + $0x10] sm:$0xff] }
 0x80a   : > { %v1639_v12 = vmul.f32 %v2449_v1, %v1638_v0  ;;  %2252 = vst.msk [vmem:[%s3045_s24 + $0x28] sm:$0xff] %vm711_vm8, %v1497_v10  ;;  %1923 = vmatpush.msra.mxu1 %v1901_v7  ;;  %v1900_v0 = vld [vmem:[#allocation9 + $0x8] sm:$0xff] }
 0x80b   : > { %2253 = vmatmul.msk.f32.vlgmr.msra.gmra.mxu0 %vm711_vm8, %v1497_v10  ;;  %v1899_v10 = vld [vmem:[#allocation9] sm:$0xff] }
 0x80c   : > { %v1640_v15 = vadd.f32 %v2449_v1, %v1639_v12  ;;  %1924 = vmatpush.msra.mxu1 %v1900_v0 }
 0x80e   : > { %v1644_v17 = vsel %vm1643_vm11, %v2449_v1, %v1640_v15  ;;  %v1654_v18 = vpop.permute.xlu1 %1653  ;;  %1925 = vmatpush.msra.mxu1 %v1899_v10 }
 0x80f   : > { %v1649_v19 = vsel %vm1646_vm12, %v1648_v16, %v1644_v17  ;;  %1674 = vmatpush.msrb.mxu0 %v1654_v18 }
 0x810   : > { %v1650_v5 = vmul.f32 %v3150_v9, %v1649_v19 }
 0x811   : > { %1827 = vmatpush.msra.mxu0 %v1807_v20 }
 0x812   : > { %2260 = vst.msk [vmem:[%s3045_s24 + $0x30] sm:$0xff] %vm711_vm8, %v1650_v5 }
 0x813   : > { %2261 = vmatmul.msk.f32.vlgmr.msrb.gmra.mxu0 %vm711_vm8, %v1650_v5  ;;  %v2410_v5 = vld [vmem:[%s3281_s7] ss:$0 sm:$0xff] }
 0x81c   : > { %v1788_v21 = vpop.xlane.xlu0 %1787 }
 0x81d   : > { %2450 = vrcp.f32 %v1788_v21  ;;  %v1800_v25 = vand.u32 2147483648, %v1788_v21  ;;  %v1798_v26 = vand.u32 2147483647, %v1788_v21  ;;  %vm1794_vm15 = vweird.f32 %v1788_v21 }
 0x81f   : > { %v1801_v28 = vor.u32 1.1754944e-38, %v1800_v25  ;;  %vm1799_vm2 = vcmp.eq.f32.partialorder %v1798_v26, 8.507059e+37  ;;  %v2412_v25 = vld [vmem:[%s3284_s10] ss:$0 sm:$0xff] }
 0x823   : > { %v2451_v22 = vpop.eup %2450 }
 0x824   : > { %v1790_v23 = vmul.f32 %v2451_v22, %v1788_v21  ;;  %vm1795_vm14 = vweird.f32 %v2451_v22 }
 0x825   : > { %vm1796_vm1 = vmor %vm1794_vm15, %vm1795_vm14 }
 0x826   : > { %v1791_v24 = vsub.f32 1.0, %v1790_v23 }
 0x828   : > { %v1792_v36 = vmul.f32 %v2451_v22, %v1791_v24 }
 0x82a   : > { %v1793_v27 = vadd.f32 %v2451_v22, %v1792_v36 }
 0x82c   : > { %v1797_v29 = vsel %vm1796_vm1, %v2451_v22, %v1793_v27 }
 0x82d   : > { %v1802_v9 = vsel %vm1799_vm2, %v1801_v28, %v1797_v29 }
 0x82e   : > { %v1803_v30 = vmul.f32 %v3157_v14, %v1802_v9  ;;  %v1680_v14 = vld [vmem:[#allocation8 + $0x18] sm:$0xf] }
 0x82f   : > { %v1981_v9 = vld [vmem:[#allocation11 + $0x38] sm:$0xff] }
 0x830   : > { %2268 = vst.msk [vmem:[%s3045_s24 + $0x38] sm:$0xff] %vm711_vm8, %v1803_v30  ;;  %2269 = vmatmul.msk.f32.vlgmr.msra.gmra.mxu0 %vm711_vm8, %v1803_v30  ;;  %1998 = vmatpush.msrb.mxu2 %v1981_v9 }
 0x832   : > { %1999 = vmatpush.msrb.mxu2 %v1980_v32 }
 0x870   : > { %v1064_v35 = vpop.f32.mrf.mxu0 }
 0x871   : > { %2231 = vmatmul.msk.f32.vlgmr.msrb.gmra.mxu3 %vm637_vm6, %v1064_v35  ;;  %v1979_v35 = vld [vmem:[#allocation11 + $0x28] sm:$0xff] }
 0x872   : > { %2246 = vmatpush.msk.msrb.mxu3 %vm893_vm13, %v1374_v34  ;;  %2000 = vmatpush.msrb.mxu2 %v1979_v35 }
 0x878   : > { %v1217_v38 = vpop.f32.mrf.mxu0 }
 0x879   : > { %2239 = vmatmul.msk.f32.vlgmr.msra.gmra.mxu3 %vm637_vm6, %v1217_v38 }
 0x87a   : > { %2254 = vmatpush.msk.msra.mxu3 %vm893_vm13, %v1527_v37 }
 0x880   : > { %v1370_v39 = vpop.f32.mrf.mxu0 }
 0x881   : > { %2247 = vmatmul.msk.f32.vlgmr.msrb.gmra.mxu3 %vm637_vm6, %v1370_v39 }
 0x882   : > { %2262 = vmatpush.msk.msrb.mxu3 %vm893_vm13, %v1680_v14  ;;  %v1978_v14 = vld [vmem:[#allocation11 + $0x20] sm:$0xff] }
 0x883   : > { %2001 = vmatpush.msrb.mxu2 %v1978_v14 }
 0x888   : > { %v1523_v41 = vpop.f32.mrf.mxu0 }
 0x889   : > { %2255 = vmatmul.msk.f32.vlgmr.msra.gmra.mxu3 %vm637_vm6, %v1523_v41 }
 0x88a   : > { %2270 = vmatpush.msk.msra.mxu3 %vm893_vm13, %v1833_v40  ;;  %v1977_v40 = vld [vmem:[#allocation11 + $0x18] sm:$0xff] }
 0x88b   : > { %2002 = vmatpush.msrb.mxu2 %v1977_v40 }
 0x890   : > { %v1676_v42 = vpop.f32.mrf.mxu0 }
 0x891   : > { %2263 = vmatmul.msk.f32.vlgmr.msrb.gmra.mxu3 %vm637_vm6, %v1676_v42 }
 0x8ad   : > { %v1829_v43 = vpop.f32.mrf.mxu0 }
 0x8ae   : > { %2271 = vmatmul.msk.f32.vlgmr.msra.gmra.mxu3 %vm637_vm6, %v1829_v43  ;;  %v1976_v43 = vld [vmem:[#allocation11 + $0x10] sm:$0xff] }
 0x8af   : > { %2003 = vmatpush.msrb.mxu2 %v1976_v43 }
 0x8f4   : > { %v1092_v46 = vpop.f32.mrf.mxu3 }
 0x8f5   : > { %v1095_v51 = vadd.f32 %v1092_v46, %v941_v50  ;;  %v1975_v46 = vld [vmem:[#allocation11 + $0x8] sm:$0xff] }
 0x8f6   : > { %2004 = vmatpush.msrb.mxu2 %v1975_v46 }
 0x8fc   : > { %v1245_v47 = vpop.f32.mrf.mxu3 }
 0x8fd   : > { %v1248_v53 = vadd.f32 %v1245_v47, %v1095_v51 }
 0x904   : > { %v1398_v48 = vpop.f32.mrf.mxu3 }
 0x905   : > { %v1401_v54 = vadd.f32 %v1398_v48, %v1248_v53  ;;  %v1974_v48 = vld [vmem:[#allocation11] sm:$0xff] }
 0x906   : > { %2005 = vmatpush.msrb.mxu2 %v1974_v48 }
 0x90c   : > { %v1551_v49 = vpop.f32.mrf.mxu3 }
 0x90d   : > { %v1554_v55 = vadd.f32 %v1551_v49, %v1401_v54 }
 0x914   : > { %v1704_v52 = vpop.f32.mrf.mxu3 }
 0x915   : > { %v1707_v45 = vadd.f32 %v1704_v52, %v1554_v55 }
 0x931   : > { %v1857_v57 = vpop.f32.mrf.mxu3 }
 0x932   : > { %v1860_v58 = vadd.f32 %v1857_v57, %v1707_v45 }
 0x934   : > { %v1865_v59 = vadd.f32 %v2409_v56, %v1860_v58 }
 0x936   : > { %v1866_v61 = vadd.f32 %v2456_v60, %v1865_v59 }
 0x938   : > { %v1869_v62 = vsel %vm565_vm0, %v1866_v61, 0.0 }
 0x939   : > { %1870 = vadd.xlane.f32.xlu1 %v1869_v62 }
 0x9ac   : > { %v1871_v63 = vpop.xlane.xlu1 %1870 }
 0x9ad   : > { %v1872_v1 = vmul.f32 %v1871_v63, %v2965_v8 }
 0x9af   : > { %v1873_v2 = vsub.f32 %v1866_v61, %v1872_v1 }
 0x9b1   : > { %v1874_v3 = vmul.f32 %v1873_v2, %v1873_v2 }
 0x9b3   : > { %v1875_v4 = vsel %vm565_vm0, %v1874_v3, 0.0 }
 0x9b4   : > { %1876 = vadd.xlane.f32.xlu2 %v1875_v4 }
 0xa27   : > { %v1877_v11 = vpop.xlane.xlu2 %1876 }
 0xa28   : > { %v1878_v12 = vmul.f32 %v1877_v11, %v2965_v8  ;;  %v2411_v8 = vld [vmem:[%s3282_s8] ss:$0 sm:$0xff] }
 0xa2a   : > { %v1879_v13 = vadd.f32 1e-05, %v1878_v12 }
 0xa2c   : > { %2452 = vrsqrt.f32 %v1879_v13  ;;  %vm1886_vm8 = vweird.f32 %v1879_v13 }
 0xa32   : > { %v2453_v15 = vpop.eup %2452 }
 0xa33   : > { %v1881_v16 = vmul.f32 %v2453_v15, %v1879_v13  ;;  %vm1887_vm6 = vweird.f32 %v2453_v15 }
 0xa34   : > { %vm1888_vm13 = vmor %vm1886_vm8, %vm1887_vm6 }
 0xa35   : > { %v1882_v17 = vmul.f32 %v2453_v15, %v1881_v16 }
 0xa37   : > { %v1883_v18 = vmul.f32 0.5, %v1882_v17 }
 0xa39   : > { %v1884_v19 = vsub.f32 1.5, %v1883_v18 }
 0xa3b   : > { %v1885_v20 = vmul.f32 %v2453_v15, %v1884_v19 }
 0xa3d   : > { %v1889_v21 = vsel %vm1888_vm13, %v2453_v15, %v1885_v20 }
 0xa3e   : > { %v1890_v22 = vmul.f32 %v1889_v21, %v1873_v2 }
 0xa40   : > { %v1894_v23 = vmul.f32 %v2410_v5, %v1890_v22 }
 0xa42   : > { %v3211_v24 = vadd.f32 %v2411_v8, %v1894_v23 }
 0xa44   : > { %2272 = vmatmul.msk.f32.vlgmr.msra.gmra.mxu1 %vm565_vm0, %v3211_v24 }
 0xac1   : > { %v1927_v36 = vpop.f32.mrf.mxu1 }
 0xac2   : > { %v1928_v26 = vadd.f32 %v2412_v25, %v1927_v36 }
 0xac4   : > { %v1931_v27 = vmul.f32 0.70710677, %v1928_v26  ;;  %v1930_v0 = vmul.f32 0.5, %v1928_v26 }
 0xac6   : > { %v1932_v28 = vmul.f32 %v1931_v27, %v1931_v27 }
 0xac8   : > { %v1933_v29 = vmin.f32 %v1932_v28, 16.0 }
 0xaca   : > { %v1934_v30 = vmul.f32 2.1237322e-06, %v1933_v29  ;;  %v1945_v31 = vmul.f32 3.8918573e-05, %v1933_v29 }
 0xacc   : > { %v1935_v33 = vadd.f32 0.00028619796, %v1934_v30  ;;  %v1946_v34 = vadd.f32 0.001143296, %v1945_v31 }
 0xace   : > { %v1936_v37 = vmul.f32 %v1935_v33, %v1933_v29  ;;  %v1947_v38 = vmul.f32 %v1946_v34, %v1933_v29 }
 0xad0   : > { %v1948_v39 = vadd.f32 0.014752088, %v1947_v38  ;;  %v1937_v41 = vadd.f32 0.0036580483, %v1936_v37 }
 0xad2   : > { %v1949_v42 = vmul.f32 %v1948_v39, %v1933_v29  ;;  %v1938_v47 = vmul.f32 %v1937_v41, %v1933_v29 }
 0xad4   : > { %v1950_v44 = vadd.f32 0.112945676, %v1949_v42  ;;  %v1939_v51 = vadd.f32 0.05243302, %v1938_v47 }
 0xad6   : > { %v1951_v49 = vmul.f32 %v1950_v44, %v1933_v29  ;;  %v1940_v54 = vmul.f32 %v1939_v51, %v1933_v29 }
 0xad8   : > { %v1952_v50 = vadd.f32 0.4994258, %v1951_v49  ;;  %v1941_v55 = vadd.f32 0.18741608, %v1940_v54 }
 0xada   : > { %v1953_v52 = vmul.f32 %v1952_v50, %v1933_v29  ;;  %v1942_v56 = vmul.f32 %v1941_v55, %v1933_v29 }
 0xadc   : > { %v1954_v53 = vadd.f32 1.0, %v1953_v52  ;;  %v1943_v60 = vadd.f32 1.1283791, %v1942_v56 }
 0xade   : > { %2454 = vrcp.f32 %v1954_v53  ;;  %v1966_v59 = vand.u32 2147483648, %v1954_v53  ;;  %v1964_v62 = vand.u32 2147483647, %v1954_v53  ;;  %vm1960_vm4 = vweird.f32 %v1954_v53 }
 0xadf   : > { %v1944_v2 = vmul.f32 %v1943_v60, %v1931_v27 }
 0xae0   : > { %v1967_v1 = vor.u32 1.1754944e-38, %v1966_v59  ;;  %vm1965_vm7 = vcmp.eq.f32.partialorder %v1964_v62, 8.507059e+37 }
 0xae4   : > { %v2455_v45 = vpop.eup %2454 }
 0xae5   : > { %v1956_v57 = vmul.f32 %v2455_v45, %v1954_v53  ;;  %vm1961_vm3 = vweird.f32 %v2455_v45 }
 0xae6   : > { %vm1962_vm5 = vmor %vm1960_vm4, %vm1961_vm3 }
 0xae7   : > { %v1957_v58 = vsub.f32 1.0, %v1956_v57 }
 0xae9   : > { %v1958_v61 = vmul.f32 %v2455_v45, %v1957_v58 }
 0xaeb   : > { %v1959_v63 = vadd.f32 %v2455_v45, %v1958_v61 }
 0xaed   : > { %v1963_v3 = vsel %vm1962_vm5, %v2455_v45, %v1959_v63 }
 0xaee   : > { %v1968_v4 = vsel %vm1965_vm7, %v1967_v1, %v1963_v3 }
 0xaef   : > { %v1969_v6 = vmul.f32 %v1968_v4, %v1944_v2 }
 0xaf1   : > { %v2273_v7 = vclamps-f32 %v1969_v6, 1.0 }
 0xaf3   : > { %v1972_v10 = vadd.f32 1.0, %v2273_v7 }
 0xaf5   : > { %v1973_v11 = vmul.f32 %v1972_v10, %v1930_v0 }
 0xaf7   : > { %2274 = vmatmul.msk.f32.vlgmr.msrb.gmra.mxu2 %vm1986_vm9, %v1973_v11 }
 0xaf8   : > { %2634 = shalt.err (!%p2631_p9)
}
 0xaf9   : > { %s2748_s24 = smov 128   ;;  %s2749_s23 = smov 8  }
 0xafa   : > { %2302 = dma.vmem_to_hbm [thread:$0]  (%p2912_p4), %s2045_s9, 1024, %s2047_s11, %s2018_s21, %s2748_s24, %s2748_s24, %s2749_s23  }
 0xafb   : > { %s2277_s3 = sshll.u32 %s2849_s20, 3  ;;  %s3320_s18 = sld [smem:[#allocation29_spill]] }
 0xafc   : > { %s3321_s28 = sld [smem:[#allocation30_spill]]  ;;  %s3322_s19 = sshll.u32 %s2943_s13, 3 }
 0xafd   : > { %s554_s26 = scalar_lea.vmem [#allocation12], %s3322_s19  ;;  %s2013_s20 = scalar_lea.sflag [#allocation5], %s2943_s13 }
 0xafe   : > { %s2030_s0 = sshll.u32 %s554_s26, 4  ;;  %s2031_s0 = int_to_ptr.vmem [resolvable:$true] %s2030_s0 }
 0xb01   : > { %v2413_v12 = vld [vmem:[%s3320_s18] ss:$0 sm:$0xff] }
 0xb02   : > { %s2028_s15 = scalar_lea.hbm %s3321_s28, %s2277_s3  ;;  %s2655_s23 = scalar_lea.hbm %s3321_s28, 16 }
 0xb03   : > { %s2032_s1 = sshll.u32 %s2028_s15, 4  ;;  %s2033_s1 = int_to_ptr.hbm [resolvable:$true] %s2032_s1 }
 0xb04   : > { %s2649_s9 = sshra.s32 %s2033_s1, 4  ;;  %s2650_s9 = int_to_ptr.hbm [resolvable:$true] %s2649_s9 }
 0xb05   : > { %s2651_s11 = scalar_lea.hbm %s2650_s9, 8  ;;  %p2656_p0 = scmp.lt.s32.totalorder %s2650_s9, %s3321_s28 }
 0xb06   : > { %p2652_p10 = scmp.ne.s32.totalorder %s2650_s9, %s2651_s11  ;;  %p2657_p2 = scmp.lt.s32.totalorder %s2655_s23, %s2651_s11 }
 0xb08   : > { %p2653_p13 = pnand %p2652_p10, %p2912_p4  ;;  %p2658_p1 = por %p2657_p2, %p2656_p0 }
 0xb0a   : > { %p2654_p11 = pneg %p2653_p13 }
 0xb0c   : > { %p2659_p3 = pnand %p2658_p1, %p2654_p11 }
 0xb7a   : > { %v2007_v13 = vpop.f32.mrf.mxu2 }
 0xb7b   : > { %v2008_v15 = vadd.f32 %v2413_v12, %v2007_v13 }
 0xb7d   : > { %v2010_v16 = vadd.f32 %v2008_v15, %v3211_v24 }
 0xb7f   : > { %2011 = vst.msk [vmem:[%s554_s26] sm:$0xff] %vm565_vm0, %v2010_v16 }
 0xb80   : > { %2662 = shalt.err (!%p2659_p3)
}
 0xb81   : > { %2301 = dma.vmem_to_hbm [thread:$0]  (%p2912_p4), %s2031_s0, 128, %s2033_s1, %s2013_s20  }
 0xb82 PF: > { %s2061_s13 = sand.u32 1, %s2701_s29   ;;  %p3323_p5 = scmp.ge.s32.totalorder %s2713_s16, 2 }
 0xb83   : > { %s2062_s17 = scalar_lea.sflag [#allocation5], %s2061_s13 }
 0xb84   : > { %p2323_p12 = pnand %p3323_p5, %p2916_p6 }
 0xb86   : > { %p2324_p7 = pneg %p2323_p12 }
 0xb88   : > { %2692 = dma.done.wait (%p2324_p7), %s2062_s17, 128  }
 0xb89   : > { %2694 = vsyncadd (%p2324_p7), %s2062_s17, 4294967168  ;;  %s2072_s18 = scalar_lea.sflag [#allocation14], %s2061_s13 }
 0xb8a   : > { %2696 = dma.done.wait (%p2324_p7), %s2072_s18, 1024  }
 0xb8b   : > { %2698 = vsyncadd (%p2324_p7), %s2072_s18, 4294966272  ;;  %s3324_s16 = sld [smem:[#allocation21_spill]]  ;;  %s3327_s29 = smov %s2705_s30 }
 0xb8c   : > { %s3325_s12 = sld [smem:[#allocation20_spill]] }
 0xb8d   : > { %s3326_s15 = sld [smem:[#allocation22_spill]] }
 0xb91   : > { %p33_p4 = scmp.ge.s32.totalorder %s3324_s16, 4  }
 0xb92   : > { %s3328_s30 = smov %s3325_s12 }
 0xb93   :  { %35 = sbr.rel (!%p33_p4) target bundleno = 18 (0x12), region = 164 }
 0xb98   :  { %2078 = vsyncpa [#allocation4], 1 }
 0xb99   :  { %2080 = vsyncpa [#allocation4 + $0x1], 1 }
 0xb9a   :  { %2081 = vsyncpa [#allocation7], 1 }
 0xb9b   :  { %2082 = vsyncpa [#allocation10], 1 }
 0xb9c   :  { %2083 = vsyncpa [#allocation5], 1 }
 0xb9d   :  { %2085 = vsyncpa [#allocation5 + $0x1], 1 }
 0xb9e   :  { %2086 = vsyncpa [#allocation14], 1 }
 0xb9f   :  { %2088 = vsyncpa [#allocation14 + $0x1], 1 }

</bundles_post_ra>
